<compile_context>
chip_gen: v7x
topology: tpu7x:2x2x1
jax: 0.10.0
libtpu: 0.0.40
codegen_flags: <defaults>
</compile_context>

<pallas_src>
import functools

import jax
import jax.numpy as jnp
import numpy as np
from jax.experimental import pallas as pl
from jax.experimental.pallas import tpu as pltpu


def _round_up(n, m):
    return ((n + m - 1) // m) * m


def lstm_model_kernel(x_ref, w_emb_t_ref, b_emb_ref, w_ih_t_ref, w_hh_t_ref,
                      b_gate_ref, w_out_t_ref, b_out_ref, out_ref,
                      gx_ref, hs_ref):
    L, TB, D = x_ref.shape
    Hp = w_emb_t_ref.shape[1]

    # ---- hoisted: embedding + input projection for the whole sequence (2 big MXU matmuls) ----
    x = x_ref[...].astype(jnp.float32).reshape(L * TB, D)
    e = jnp.dot(x, w_emb_t_ref[...], preferred_element_type=jnp.float32) + b_emb_ref[...]
    gx = jnp.dot(e, w_ih_t_ref[...], preferred_element_type=jnp.float32) + b_gate_ref[...]
    gx_ref[...] = gx.reshape(L, TB, 4 * Hp)            # time-major precomputed gates

    w_hh_t = w_hh_t_ref[...]                           # hoisted out of the loop

    def step(t, carry):
        h, c = carry
        # Only the dependent matmul stays on the serial critical path.
        gates = gx_ref[t] + jnp.dot(h, w_hh_t, preferred_element_type=jnp.float32)  # (TB, 4Hp)
        # PyTorch gate order i, f, g, o; each gate block is lane-aligned at a multiple of Hp(=128k).
        i_g = jax.nn.sigmoid(gates[:, 0 * Hp:1 * Hp])
        f_g = jax.nn.sigmoid(gates[:, 1 * Hp:2 * Hp])
        g_g = jnp.tanh(gates[:, 2 * Hp:3 * Hp])
        o_g = jax.nn.sigmoid(gates[:, 3 * Hp:4 * Hp])
        c_new = f_g * c + i_g * g_g
        h_new = o_g * jnp.tanh(c_new)
        hs_ref[t] = h_new                              # leading-axis dense store into scratch
        return h_new, c_new

    h0 = jnp.zeros((TB, Hp), jnp.float32)              # init_hidden() -> zeros
    c0 = jnp.zeros((TB, Hp), jnp.float32)
    # Short static trip count: fully unroll so the LLO scheduler can overlap EUP/VPU with the MXU.
    jax.lax.fori_loop(0, L, step, (h0, c0), unroll=True)

    # ---- hoisted: output Linear over all timesteps + one dense store ----
    hs = hs_ref[...].reshape(L * TB, Hp)
    y = jnp.dot(hs, w_out_t_ref[...], preferred_element_type=jnp.float32) + b_out_ref[...]
    out_ref[...] = y.reshape(L, TB, D).astype(out_ref.dtype)


@jax.jit
def base_model_forward(x, params):
    B, L, D = x.shape
    H = params["w_emb"].shape[0]
    Hp = _round_up(H, 128)      # lane-aligned gate blocks
    Bp = _round_up(B, 8)        # sublane-dense batch
    TB = min(Bp, 128)           # batch tile per grid step (multiple of 8)
    f32 = jnp.float32

    # ---- pre-transpose + zero-pad weights outside the kernel (free layout plumbing) ----
    w_emb_t = jnp.zeros((D, Hp), f32).at[:, :H].set(params["w_emb"].T)
    b_emb = jnp.zeros((1, Hp), f32).at[:, :H].set(params["b_emb"])

    def gate_pack(w):  # (4H, H) -> (Hp, 4*Hp), each gate block lane-aligned at g*Hp
        wt = w.T.reshape(H, 4, H)
        return jnp.zeros((Hp, 4, Hp), f32).at[:H, :, :H].set(wt).reshape(Hp, 4 * Hp)

    w_ih_t = gate_pack(params["w_ih"])
    w_hh_t = gate_pack(params["w_hh"])
    bg = (params["b_ih"] + params["b_hh"]).reshape(4, H)
    b_gate = jnp.zeros((4, Hp), f32).at[:, :H].set(bg).reshape(1, 4 * Hp)
    w_out_t = jnp.zeros((Hp, D), f32).at[:H, :].set(params["w_out"].T)
    b_out = params["b_out"].astype(f32)

    # time-major, batch-padded input
    x_tm = jnp.zeros((L, Bp, D), x.dtype).at[:, :B, :].set(jnp.swapaxes(x, 0, 1))

    def full(shape):
        return pl.BlockSpec(shape, lambda b, _n=len(shape): (0,) * _n)

    out_tm = pl.pallas_call(
        lstm_model_kernel,
        out_shape=jax.ShapeDtypeStruct((L, Bp, D), x.dtype),
        grid=(Bp // TB,),
        in_specs=[
            pl.BlockSpec((L, TB, D), lambda b: (0, b, 0)),                 # x (time-major tile)
            full((D, Hp)), full((1, Hp)),                                  # emb weights
            full((Hp, 4 * Hp)), full((Hp, 4 * Hp)), full((1, 4 * Hp)),     # LSTM weights/bias
            full((Hp, D)), full((1, D)),                                   # output weights
        ],
        out_specs=pl.BlockSpec((L, TB, D), lambda b: (0, b, 0)),
        scratch_shapes=[
            pltpu.VMEM((L, TB, 4 * Hp), jnp.float32),   # hoisted input-projection gates
            pltpu.VMEM((L, TB, Hp), jnp.float32),       # per-step hidden states
        ],
        compiler_params=pltpu.CompilerParams(dimension_semantics=("parallel",)),
    )(x_tm, w_emb_t, b_emb, w_ih_t, w_hh_t, b_gate, w_out_t, b_out)

    return jnp.swapaxes(out_tm[:, :B, :], 0, 1)   # back to (B, L, D)


def init_params(key, dim, hid_dim):
    ks = jax.random.split(key, 8)
    k_emb = 1.0 / np.sqrt(dim)
    k_lstm = 1.0 / np.sqrt(hid_dim)
    k_out = 1.0 / np.sqrt(hid_dim)
    u = lambda k, shape, b: jax.random.uniform(k, shape, jnp.float32, -b, b)
    return {
        # nn.Linear(dim, hid_dim)
        "w_emb": u(ks[0], (hid_dim, dim), k_emb),
        "b_emb": u(ks[1], (1, hid_dim), k_emb),
        # nn.LSTM(hid_dim, hid_dim, 1): weight_ih_l0 (4H, H), weight_hh_l0 (4H, H)
        "w_ih": u(ks[2], (4 * hid_dim, hid_dim), k_lstm),
        "w_hh": u(ks[3], (4 * hid_dim, hid_dim), k_lstm),
        "b_ih": u(ks[4], (1, 4 * hid_dim), k_lstm),
        "b_hh": u(ks[5], (1, 4 * hid_dim), k_lstm),
        # nn.Linear(hid_dim, dim)
        "w_out": u(ks[6], (dim, hid_dim), k_out),
        "b_out": u(ks[7], (1, dim), k_out),
    }


def reference_forward(x, p):
    """Plain-JAX reference matching PyTorch BaseModel.forward."""
    B, L, D = x.shape
    H = p["w_emb"].shape[0]
    e = jnp.einsum("bld,hd->blh", x, p["w_emb"]) + p["b_emb"][0]

    def step(carry, x_t):
        h, c = carry
        gates = x_t @ p["w_ih"].T + h @ p["w_hh"].T + p["b_ih"][0] + p["b_hh"][0]
        i_g = jax.nn.sigmoid(gates[:, 0:H])
        f_g = jax.nn.sigmoid(gates[:, H:2 * H])
        g_g = jnp.tanh(gates[:, 2 * H:3 * H])
        o_g = jax.nn.sigmoid(gates[:, 3 * H:4 * H])
        c = f_g * c + i_g * g_g
        h = o_g * jnp.tanh(c)
        return (h, c), h

    h0 = jnp.zeros((B, H), jnp.float32)
    c0 = jnp.zeros((B, H), jnp.float32)
    _, hs = jax.lax.scan(step, (h0, c0), jnp.swapaxes(e, 0, 1))  # (L, B, H)
    hs = jnp.swapaxes(hs, 0, 1)                                  # (B, L, H)
    return jnp.einsum("blh,dh->bld", hs, p["w_out"]) + p["b_out"][0]


if __name__ == "__main__":
    dim, length, hid_dim, batch = 4, 8, 32, 2

    key = jax.random.PRNGKey(0)
    k_x, k_p = jax.random.split(key)
    x = jax.random.normal(k_x, (batch, length, dim), jnp.float32)
    params = init_params(k_p, dim, hid_dim)

    out = jax.block_until_ready(base_model_forward(x, params))
    ref = jax.block_until_ready(reference_forward(x, params))

    assert out.shape == (batch, length, dim)
    np.testing.assert_allclose(np.asarray(out), np.asarray(ref), rtol=1e-5, atol=1e-5)
    print("KERNEL_OK")
</pallas_src>

<mosaic_0001>
module attributes {stable_mosaic.version = 11 : i64} {
  func.func @lstm_model_kernel(%arg0: i32, %arg1: memref<8x8x4xf32, #tpu.memory_space<vmem>>, %arg2: memref<4x128xf32, #tpu.memory_space<vmem>>, %arg3: memref<1x128xf32, #tpu.memory_space<vmem>>, %arg4: memref<128x512xf32, #tpu.memory_space<vmem>>, %arg5: memref<128x512xf32, #tpu.memory_space<vmem>>, %arg6: memref<1x512xf32, #tpu.memory_space<vmem>>, %arg7: memref<128x4xf32, #tpu.memory_space<vmem>>, %arg8: memref<1x4xf32, #tpu.memory_space<vmem>>, %arg9: memref<8x8x4xf32, #tpu.memory_space<vmem>>, %arg10: memref<8x8x512xf32, #tpu.memory_space<vmem>>, %arg11: memref<8x8x128xf32, #tpu.memory_space<vmem>>) attributes {dimension_semantics = [#tpu.dimension_semantics<parallel>], iteration_bounds = array<i64: 1>, scalar_prefetch = 0 : i64, scratch_operands = 2 : i64, tpu.core_type = #tpu.core_type<tc>, window_params = [{transform_indices = @transform_0, window_bounds = array<i64: 8, 8, 4>}, {pipeline_mode = #tpu.pipeline_mode<synchronous>, transform_indices = @transform_1, window_bounds = array<i64: 4, 128>}, {pipeline_mode = #tpu.pipeline_mode<synchronous>, transform_indices = @transform_2, window_bounds = array<i64: 1, 128>}, {pipeline_mode = #tpu.pipeline_mode<synchronous>, transform_indices = @transform_3, window_bounds = array<i64: 128, 512>}, {pipeline_mode = #tpu.pipeline_mode<synchronous>, transform_indices = @transform_4, window_bounds = array<i64: 128, 512>}, {pipeline_mode = #tpu.pipeline_mode<synchronous>, transform_indices = @transform_5, window_bounds = array<i64: 1, 512>}, {pipeline_mode = #tpu.pipeline_mode<synchronous>, transform_indices = @transform_6, window_bounds = array<i64: 128, 4>}, {pipeline_mode = #tpu.pipeline_mode<synchronous>, transform_indices = @transform_7, window_bounds = array<i64: 1, 4>}, {transform_indices = @transform_8, window_bounds = array<i64: 8, 8, 4>}]} {
    %c0 = arith.constant 0 : index
    %c0_0 = arith.constant 0 : index
    %c0_1 = arith.constant 0 : index
    %0 = vector.load %arg1[%c0, %c0_0, %c0_1] : memref<8x8x4xf32, #tpu.memory_space<vmem>>, vector<8x8x4xf32>
    %1 = vector.shape_cast %0 : vector<8x8x4xf32> to vector<64x4xf32>
    %c0_2 = arith.constant 0 : index
    %c0_3 = arith.constant 0 : index
    %2 = vector.load %arg2[%c0_2, %c0_3] : memref<4x128xf32, #tpu.memory_space<vmem>>, vector<4x128xf32>
    %cst = arith.constant dense<0.000000e+00> : vector<64x128xf32>
    %3 = tpu.matmul %1, %2, %cst {dimension_numbers = #tpu.dot_dimension_numbers<[1], [0], [0], [1], [0, 0, 1, 1], [], []>} : vector<64x4xf32>, vector<4x128xf32>, vector<64x128xf32> -> vector<64x128xf32>
    %c0_4 = arith.constant 0 : index
    %c0_5 = arith.constant 0 : index
    %4 = vector.load %arg3[%c0_4, %c0_5] : memref<1x128xf32, #tpu.memory_space<vmem>>, vector<1x128xf32>
    %5 = vector.broadcast %4 : vector<1x128xf32> to vector<64x128xf32>
    %6 = arith.addf %3, %5 : vector<64x128xf32>
    %c0_6 = arith.constant 0 : index
    %c0_7 = arith.constant 0 : index
    %7 = vector.load %arg4[%c0_6, %c0_7] : memref<128x512xf32, #tpu.memory_space<vmem>>, vector<128x512xf32>
    %cst_8 = arith.constant dense<0.000000e+00> : vector<64x512xf32>
    %8 = tpu.matmul %6, %7, %cst_8 {dimension_numbers = #tpu.dot_dimension_numbers<[1], [0], [0], [1], [0, 0, 1, 1], [], []>} : vector<64x128xf32>, vector<128x512xf32>, vector<64x512xf32> -> vector<64x512xf32>
    %c0_9 = arith.constant 0 : index
    %c0_10 = arith.constant 0 : index
    %9 = vector.load %arg6[%c0_9, %c0_10] : memref<1x512xf32, #tpu.memory_space<vmem>>, vector<1x512xf32>
    %10 = vector.broadcast %9 : vector<1x512xf32> to vector<64x512xf32>
    %11 = arith.addf %8, %10 : vector<64x512xf32>
    %12 = vector.shape_cast %11 : vector<64x512xf32> to vector<8x8x512xf32>
    %c0_11 = arith.constant 0 : index
    %c0_12 = arith.constant 0 : index
    %c0_13 = arith.constant 0 : index
    %13 = vector.load %arg10[%c0_11, %c0_12, %c0_13] : memref<8x8x512xf32, #tpu.memory_space<vmem>>, vector<8x8x512xf32>
    tpu.vector_store %arg10[%c0_11, %c0_12, %c0_13], %12 {strides = array<i32>} : memref<8x8x512xf32, #tpu.memory_space<vmem>>, vector<8x8x512xf32>,
    %c0_14 = arith.constant 0 : index
    %c0_15 = arith.constant 0 : index
    %14 = vector.load %arg5[%c0_14, %c0_15] : memref<128x512xf32, #tpu.memory_space<vmem>>, vector<128x512xf32>
    %cst_16 = arith.constant 0.000000e+00 : f32
    %15 = vector.broadcast %cst_16 : f32 to vector<8x128xf32>
    %cst_17 = arith.constant 0.000000e+00 : f32
    %16 = vector.broadcast %cst_17 : f32 to vector<8x128xf32>
    %c0_i32 = arith.constant 0 : i32
    %17 = arith.index_cast %c0_i32 : i32 to index
    %c0_18 = arith.constant 0 : index
    %c0_19 = arith.constant 0 : index
    %18 = vector.load %arg10[%17, %c0_18, %c0_19] : memref<8x8x512xf32, #tpu.memory_space<vmem>>, vector<1x8x512xf32>
    %19 = vector.shape_cast %18 : vector<1x8x512xf32> to vector<8x512xf32>
    %cst_20 = arith.constant dense<0.000000e+00> : vector<8x512xf32>
    %20 = tpu.matmul %15, %14, %cst_20 {dimension_numbers = #tpu.dot_dimension_numbers<[1], [0], [0], [1], [0, 0, 1, 1], [], []>} : vector<8x128xf32>, vector<128x512xf32>, vector<8x512xf32> -> vector<8x512xf32>
    %21 = arith.addf %19, %20 : vector<8x512xf32>
    %22 = vector.extract_strided_slice %21 {offsets = [0, 0], sizes = [8, 128], strides = [1, 1]} : vector<8x512xf32> to vector<8x128xf32>
    %23 = arith.negf %22 : vector<8x128xf32>
    %24 = math.exp %23 : vector<8x128xf32>
    %cst_21 = arith.constant 1.000000e+00 : f32
    %25 = vector.broadcast %cst_21 : f32 to vector<8x128xf32>
    %26 = arith.addf %25, %24 : vector<8x128xf32>
    %27 = arith.divf %25, %26 : vector<8x128xf32>
    %28 = vector.extract_strided_slice %21 {offsets = [0, 128], sizes = [8, 128], strides = [1, 1]} : vector<8x512xf32> to vector<8x128xf32>
    %29 = arith.negf %28 : vector<8x128xf32>
    %30 = math.exp %29 : vector<8x128xf32>
    %cst_22 = arith.constant 1.000000e+00 : f32
    %31 = vector.broadcast %cst_22 : f32 to vector<8x128xf32>
    %32 = arith.addf %31, %30 : vector<8x128xf32>
    %33 = arith.divf %31, %32 : vector<8x128xf32>
    %34 = vector.extract_strided_slice %21 {offsets = [0, 256], sizes = [8, 128], strides = [1, 1]} : vector<8x512xf32> to vector<8x128xf32>
    %35 = math.tanh %34 : vector<8x128xf32>
    %36 = vector.extract_strided_slice %21 {offsets = [0, 384], sizes = [8, 128], strides = [1, 1]} : vector<8x512xf32> to vector<8x128xf32>
    %37 = arith.negf %36 : vector<8x128xf32>
    %38 = math.exp %37 : vector<8x128xf32>
    %cst_23 = arith.constant 1.000000e+00 : f32
    %39 = vector.broadcast %cst_23 : f32 to vector<8x128xf32>
    %40 = arith.addf %39, %38 : vector<8x128xf32>
    %41 = arith.divf %39, %40 : vector<8x128xf32>
    %42 = arith.mulf %33, %16 : vector<8x128xf32>
    %43 = arith.mulf %27, %35 : vector<8x128xf32>
    %44 = arith.addf %42, %43 : vector<8x128xf32>
    %45 = math.tanh %44 : vector<8x128xf32>
    %46 = arith.mulf %41, %45 : vector<8x128xf32>
    %47 = arith.index_cast %c0_i32 : i32 to index
    %c0_24 = arith.constant 0 : index
    %c0_25 = arith.constant 0 : index
    %48 = vector.load %arg11[%47, %c0_24, %c0_25] : memref<8x8x128xf32, #tpu.memory_space<vmem>>, vector<1x8x128xf32>
    %49 = vector.shape_cast %48 : vector<1x8x128xf32> to vector<8x128xf32>
    %50 = vector.shape_cast %46 : vector<8x128xf32> to vector<1x8x128xf32>
    tpu.vector_store %arg11[%47, %c0_24, %c0_25], %50 {strides = array<i32>} : memref<8x8x128xf32, #tpu.memory_space<vmem>>, vector<1x8x128xf32>,
    %c1_i32 = arith.constant 1 : i32
    %51 = arith.index_cast %c1_i32 : i32 to index
    %c0_26 = arith.constant 0 : index
    %c0_27 = arith.constant 0 : index
    %52 = vector.load %arg10[%51, %c0_26, %c0_27] : memref<8x8x512xf32, #tpu.memory_space<vmem>>, vector<1x8x512xf32>
    %53 = vector.shape_cast %52 : vector<1x8x512xf32> to vector<8x512xf32>
    %cst_28 = arith.constant dense<0.000000e+00> : vector<8x512xf32>
    %54 = tpu.matmul %46, %14, %cst_28 {dimension_numbers = #tpu.dot_dimension_numbers<[1], [0], [0], [1], [0, 0, 1, 1], [], []>} : vector<8x128xf32>, vector<128x512xf32>, vector<8x512xf32> -> vector<8x512xf32>
    %55 = arith.addf %53, %54 : vector<8x512xf32>
    %56 = vector.extract_strided_slice %55 {offsets = [0, 0], sizes = [8, 128], strides = [1, 1]} : vector<8x512xf32> to vector<8x128xf32>
    %57 = arith.negf %56 : vector<8x128xf32>
    %58 = math.exp %57 : vector<8x128xf32>
    %cst_29 = arith.constant 1.000000e+00 : f32
    %59 = vector.broadcast %cst_29 : f32 to vector<8x128xf32>
    %60 = arith.addf %59, %58 : vector<8x128xf32>
    %61 = arith.divf %59, %60 : vector<8x128xf32>
    %62 = vector.extract_strided_slice %55 {offsets = [0, 128], sizes = [8, 128], strides = [1, 1]} : vector<8x512xf32> to vector<8x128xf32>
    %63 = arith.negf %62 : vector<8x128xf32>
    %64 = math.exp %63 : vector<8x128xf32>
    %cst_30 = arith.constant 1.000000e+00 : f32
    %65 = vector.broadcast %cst_30 : f32 to vector<8x128xf32>
    %66 = arith.addf %65, %64 : vector<8x128xf32>
    %67 = arith.divf %65, %66 : vector<8x128xf32>
    %68 = vector.extract_strided_slice %55 {offsets = [0, 256], sizes = [8, 128], strides = [1, 1]} : vector<8x512xf32> to vector<8x128xf32>
    %69 = math.tanh %68 : vector<8x128xf32>
    %70 = vector.extract_strided_slice %55 {offsets = [0, 384], sizes = [8, 128], strides = [1, 1]} : vector<8x512xf32> to vector<8x128xf32>
    %71 = arith.negf %70 : vector<8x128xf32>
    %72 = math.exp %71 : vector<8x128xf32>
    %cst_31 = arith.constant 1.000000e+00 : f32
    %73 = vector.broadcast %cst_31 : f32 to vector<8x128xf32>
    %74 = arith.addf %73, %72 : vector<8x128xf32>
    %75 = arith.divf %73, %74 : vector<8x128xf32>
    %76 = arith.mulf %67, %44 : vector<8x128xf32>
    %77 = arith.mulf %61, %69 : vector<8x128xf32>
    %78 = arith.addf %76, %77 : vector<8x128xf32>
    %79 = math.tanh %78 : vector<8x128xf32>
    %80 = arith.mulf %75, %79 : vector<8x128xf32>
    %81 = arith.index_cast %c1_i32 : i32 to index
    %c0_32 = arith.constant 0 : index
    %c0_33 = arith.constant 0 : index
    %82 = vector.load %arg11[%81, %c0_32, %c0_33] : memref<8x8x128xf32, #tpu.memory_space<vmem>>, vector<1x8x128xf32>
    %83 = vector.shape_cast %82 : vector<1x8x128xf32> to vector<8x128xf32>
    %84 = vector.shape_cast %80 : vector<8x128xf32> to vector<1x8x128xf32>
    tpu.vector_store %arg11[%81, %c0_32, %c0_33], %84 {strides = array<i32>} : memref<8x8x128xf32, #tpu.memory_space<vmem>>, vector<1x8x128xf32>,
    %c2_i32 = arith.constant 2 : i32
    %85 = arith.index_cast %c2_i32 : i32 to index
    %c0_34 = arith.constant 0 : index
    %c0_35 = arith.constant 0 : index
    %86 = vector.load %arg10[%85, %c0_34, %c0_35] : memref<8x8x512xf32, #tpu.memory_space<vmem>>, vector<1x8x512xf32>
    %87 = vector.shape_cast %86 : vector<1x8x512xf32> to vector<8x512xf32>
    %cst_36 = arith.constant dense<0.000000e+00> : vector<8x512xf32>
    %88 = tpu.matmul %80, %14, %cst_36 {dimension_numbers = #tpu.dot_dimension_numbers<[1], [0], [0], [1], [0, 0, 1, 1], [], []>} : vector<8x128xf32>, vector<128x512xf32>, vector<8x512xf32> -> vector<8x512xf32>
    %89 = arith.addf %87, %88 : vector<8x512xf32>
    %90 = vector.extract_strided_slice %89 {offsets = [0, 0], sizes = [8, 128], strides = [1, 1]} : vector<8x512xf32> to vector<8x128xf32>
    %91 = arith.negf %90 : vector<8x128xf32>
    %92 = math.exp %91 : vector<8x128xf32>
    %cst_37 = arith.constant 1.000000e+00 : f32
    %93 = vector.broadcast %cst_37 : f32 to vector<8x128xf32>
    %94 = arith.addf %93, %92 : vector<8x128xf32>
    %95 = arith.divf %93, %94 : vector<8x128xf32>
    %96 = vector.extract_strided_slice %89 {offsets = [0, 128], sizes = [8, 128], strides = [1, 1]} : vector<8x512xf32> to vector<8x128xf32>
    %97 = arith.negf %96 : vector<8x128xf32>
    %98 = math.exp %97 : vector<8x128xf32>
    %cst_38 = arith.constant 1.000000e+00 : f32
    %99 = vector.broadcast %cst_38 : f32 to vector<8x128xf32>
    %100 = arith.addf %99, %98 : vector<8x128xf32>
    %101 = arith.divf %99, %100 : vector<8x128xf32>
    %102 = vector.extract_strided_slice %89 {offsets = [0, 256], sizes = [8, 128], strides = [1, 1]} : vector<8x512xf32> to vector<8x128xf32>
    %103 = math.tanh %102 : vector<8x128xf32>
    %104 = vector.extract_strided_slice %89 {offsets = [0, 384], sizes = [8, 128], strides = [1, 1]} : vector<8x512xf32> to vector<8x128xf32>
    %105 = arith.negf %104 : vector<8x128xf32>
    %106 = math.exp %105 : vector<8x128xf32>
    %cst_39 = arith.constant 1.000000e+00 : f32
    %107 = vector.broadcast %cst_39 : f32 to vector<8x128xf32>
    %108 = arith.addf %107, %106 : vector<8x128xf32>
    %109 = arith.divf %107, %108 : vector<8x128xf32>
    %110 = arith.mulf %101, %78 : vector<8x128xf32>
    %111 = arith.mulf %95, %103 : vector<8x128xf32>
    %112 = arith.addf %110, %111 : vector<8x128xf32>
    %113 = math.tanh %112 : vector<8x128xf32>
    %114 = arith.mulf %109, %113 : vector<8x128xf32>
    %115 = arith.index_cast %c2_i32 : i32 to index
    %c0_40 = arith.constant 0 : index
    %c0_41 = arith.constant 0 : index
    %116 = vector.load %arg11[%115, %c0_40, %c0_41] : memref<8x8x128xf32, #tpu.memory_space<vmem>>, vector<1x8x128xf32>
    %117 = vector.shape_cast %116 : vector<1x8x128xf32> to vector<8x128xf32>
    %118 = vector.shape_cast %114 : vector<8x128xf32> to vector<1x8x128xf32>
    tpu.vector_store %arg11[%115, %c0_40, %c0_41], %118 {strides = array<i32>} : memref<8x8x128xf32, #tpu.memory_space<vmem>>, vector<1x8x128xf32>,
    %c3_i32 = arith.constant 3 : i32
    %119 = arith.index_cast %c3_i32 : i32 to index
    %c0_42 = arith.constant 0 : index
    %c0_43 = arith.constant 0 : index
    %120 = vector.load %arg10[%119, %c0_42, %c0_43] : memref<8x8x512xf32, #tpu.memory_space<vmem>>, vector<1x8x512xf32>
    %121 = vector.shape_cast %120 : vector<1x8x512xf32> to vector<8x512xf32>
    %cst_44 = arith.constant dense<0.000000e+00> : vector<8x512xf32>
    %122 = tpu.matmul %114, %14, %cst_44 {dimension_numbers = #tpu.dot_dimension_numbers<[1], [0], [0], [1], [0, 0, 1, 1], [], []>} : vector<8x128xf32>, vector<128x512xf32>, vector<8x512xf32> -> vector<8x512xf32>
    %123 = arith.addf %121, %122 : vector<8x512xf32>
    %124 = vector.extract_strided_slice %123 {offsets = [0, 0], sizes = [8, 128], strides = [1, 1]} : vector<8x512xf32> to vector<8x128xf32>
    %125 = arith.negf %124 : vector<8x128xf32>
    %126 = math.exp %125 : vector<8x128xf32>
    %cst_45 = arith.constant 1.000000e+00 : f32
    %127 = vector.broadcast %cst_45 : f32 to vector<8x128xf32>
    %128 = arith.addf %127, %126 : vector<8x128xf32>
    %129 = arith.divf %127, %128 : vector<8x128xf32>
    %130 = vector.extract_strided_slice %123 {offsets = [0, 128], sizes = [8, 128], strides = [1, 1]} : vector<8x512xf32> to vector<8x128xf32>
    %131 = arith.negf %130 : vector<8x128xf32>
    %132 = math.exp %131 : vector<8x128xf32>
    %cst_46 = arith.constant 1.000000e+00 : f32
    %133 = vector.broadcast %cst_46 : f32 to vector<8x128xf32>
    %134 = arith.addf %133, %132 : vector<8x128xf32>
    %135 = arith.divf %133, %134 : vector<8x128xf32>
    %136 = vector.extract_strided_slice %123 {offsets = [0, 256], sizes = [8, 128], strides = [1, 1]} : vector<8x512xf32> to vector<8x128xf32>
    %137 = math.tanh %136 : vector<8x128xf32>
    %138 = vector.extract_strided_slice %123 {offsets = [0, 384], sizes = [8, 128], strides = [1, 1]} : vector<8x512xf32> to vector<8x128xf32>
    %139 = arith.negf %138 : vector<8x128xf32>
    %140 = math.exp %139 : vector<8x128xf32>
    %cst_47 = arith.constant 1.000000e+00 : f32
    %141 = vector.broadcast %cst_47 : f32 to vector<8x128xf32>
    %142 = arith.addf %141, %140 : vector<8x128xf32>
    %143 = arith.divf %141, %142 : vector<8x128xf32>
    %144 = arith.mulf %135, %112 : vector<8x128xf32>
    %145 = arith.mulf %129, %137 : vector<8x128xf32>
    %146 = arith.addf %144, %145 : vector<8x128xf32>
    %147 = math.tanh %146 : vector<8x128xf32>
    %148 = arith.mulf %143, %147 : vector<8x128xf32>
    %149 = arith.index_cast %c3_i32 : i32 to index
    %c0_48 = arith.constant 0 : index
    %c0_49 = arith.constant 0 : index
    %150 = vector.load %arg11[%149, %c0_48, %c0_49] : memref<8x8x128xf32, #tpu.memory_space<vmem>>, vector<1x8x128xf32>
    %151 = vector.shape_cast %150 : vector<1x8x128xf32> to vector<8x128xf32>
    %152 = vector.shape_cast %148 : vector<8x128xf32> to vector<1x8x128xf32>
    tpu.vector_store %arg11[%149, %c0_48, %c0_49], %152 {strides = array<i32>} : memref<8x8x128xf32, #tpu.memory_space<vmem>>, vector<1x8x128xf32>,
    %c4_i32 = arith.constant 4 : i32
    %153 = arith.index_cast %c4_i32 : i32 to index
    %c0_50 = arith.constant 0 : index
    %c0_51 = arith.constant 0 : index
    %154 = vector.load %arg10[%153, %c0_50, %c0_51] : memref<8x8x512xf32, #tpu.memory_space<vmem>>, vector<1x8x512xf32>
    %155 = vector.shape_cast %154 : vector<1x8x512xf32> to vector<8x512xf32>
    %cst_52 = arith.constant dense<0.000000e+00> : vector<8x512xf32>
    %156 = tpu.matmul %148, %14, %cst_52 {dimension_numbers = #tpu.dot_dimension_numbers<[1], [0], [0], [1], [0, 0, 1, 1], [], []>} : vector<8x128xf32>, vector<128x512xf32>, vector<8x512xf32> -> vector<8x512xf32>
    %157 = arith.addf %155, %156 : vector<8x512xf32>
    %158 = vector.extract_strided_slice %157 {offsets = [0, 0], sizes = [8, 128], strides = [1, 1]} : vector<8x512xf32> to vector<8x128xf32>
    %159 = arith.negf %158 : vector<8x128xf32>
    %160 = math.exp %159 : vector<8x128xf32>
    %cst_53 = arith.constant 1.000000e+00 : f32
    %161 = vector.broadcast %cst_53 : f32 to vector<8x128xf32>
    %162 = arith.addf %161, %160 : vector<8x128xf32>
    %163 = arith.divf %161, %162 : vector<8x128xf32>
    %164 = vector.extract_strided_slice %157 {offsets = [0, 128], sizes = [8, 128], strides = [1, 1]} : vector<8x512xf32> to vector<8x128xf32>
    %165 = arith.negf %164 : vector<8x128xf32>
    %166 = math.exp %165 : vector<8x128xf32>
    %cst_54 = arith.constant 1.000000e+00 : f32
    %167 = vector.broadcast %cst_54 : f32 to vector<8x128xf32>
    %168 = arith.addf %167, %166 : vector<8x128xf32>
    %169 = arith.divf %167, %168 : vector<8x128xf32>
    %170 = vector.extract_strided_slice %157 {offsets = [0, 256], sizes = [8, 128], strides = [1, 1]} : vector<8x512xf32> to vector<8x128xf32>
    %171 = math.tanh %170 : vector<8x128xf32>
    %172 = vector.extract_strided_slice %157 {offsets = [0, 384], sizes = [8, 128], strides = [1, 1]} : vector<8x512xf32> to vector<8x128xf32>
    %173 = arith.negf %172 : vector<8x128xf32>
    %174 = math.exp %173 : vector<8x128xf32>
    %cst_55 = arith.constant 1.000000e+00 : f32
    %175 = vector.broadcast %cst_55 : f32 to vector<8x128xf32>
    %176 = arith.addf %175, %174 : vector<8x128xf32>
    %177 = arith.divf %175, %176 : vector<8x128xf32>
    %178 = arith.mulf %169, %146 : vector<8x128xf32>
    %179 = arith.mulf %163, %171 : vector<8x128xf32>
    %180 = arith.addf %178, %179 : vector<8x128xf32>
    %181 = math.tanh %180 : vector<8x128xf32>
    %182 = arith.mulf %177, %181 : vector<8x128xf32>
    %183 = arith.index_cast %c4_i32 : i32 to index
    %c0_56 = arith.constant 0 : index
    %c0_57 = arith.constant 0 : index
    %184 = vector.load %arg11[%183, %c0_56, %c0_57] : memref<8x8x128xf32, #tpu.memory_space<vmem>>, vector<1x8x128xf32>
    %185 = vector.shape_cast %184 : vector<1x8x128xf32> to vector<8x128xf32>
    %186 = vector.shape_cast %182 : vector<8x128xf32> to vector<1x8x128xf32>
    tpu.vector_store %arg11[%183, %c0_56, %c0_57], %186 {strides = array<i32>} : memref<8x8x128xf32, #tpu.memory_space<vmem>>, vector<1x8x128xf32>,
    %c5_i32 = arith.constant 5 : i32
    %187 = arith.index_cast %c5_i32 : i32 to index
    %c0_58 = arith.constant 0 : index
    %c0_59 = arith.constant 0 : index
    %188 = vector.load %arg10[%187, %c0_58, %c0_59] : memref<8x8x512xf32, #tpu.memory_space<vmem>>, vector<1x8x512xf32>
    %189 = vector.shape_cast %188 : vector<1x8x512xf32> to vector<8x512xf32>
    %cst_60 = arith.constant dense<0.000000e+00> : vector<8x512xf32>
    %190 = tpu.matmul %182, %14, %cst_60 {dimension_numbers = #tpu.dot_dimension_numbers<[1], [0], [0], [1], [0, 0, 1, 1], [], []>} : vector<8x128xf32>, vector<128x512xf32>, vector<8x512xf32> -> vector<8x512xf32>
    %191 = arith.addf %189, %190 : vector<8x512xf32>
    %192 = vector.extract_strided_slice %191 {offsets = [0, 0], sizes = [8, 128], strides = [1, 1]} : vector<8x512xf32> to vector<8x128xf32>
    %193 = arith.negf %192 : vector<8x128xf32>
    %194 = math.exp %193 : vector<8x128xf32>
    %cst_61 = arith.constant 1.000000e+00 : f32
    %195 = vector.broadcast %cst_61 : f32 to vector<8x128xf32>
    %196 = arith.addf %195, %194 : vector<8x128xf32>
    %197 = arith.divf %195, %196 : vector<8x128xf32>
    %198 = vector.extract_strided_slice %191 {offsets = [0, 128], sizes = [8, 128], strides = [1, 1]} : vector<8x512xf32> to vector<8x128xf32>
    %199 = arith.negf %198 : vector<8x128xf32>
    %200 = math.exp %199 : vector<8x128xf32>
    %cst_62 = arith.constant 1.000000e+00 : f32
    %201 = vector.broadcast %cst_62 : f32 to vector<8x128xf32>
    %202 = arith.addf %201, %200 : vector<8x128xf32>
    %203 = arith.divf %201, %202 : vector<8x128xf32>
    %204 = vector.extract_strided_slice %191 {offsets = [0, 256], sizes = [8, 128], strides = [1, 1]} : vector<8x512xf32> to vector<8x128xf32>
    %205 = math.tanh %204 : vector<8x128xf32>
    %206 = vector.extract_strided_slice %191 {offsets = [0, 384], sizes = [8, 128], strides = [1, 1]} : vector<8x512xf32> to vector<8x128xf32>
    %207 = arith.negf %206 : vector<8x128xf32>
    %208 = math.exp %207 : vector<8x128xf32>
    %cst_63 = arith.constant 1.000000e+00 : f32
    %209 = vector.broadcast %cst_63 : f32 to vector<8x128xf32>
    %210 = arith.addf %209, %208 : vector<8x128xf32>
    %211 = arith.divf %209, %210 : vector<8x128xf32>
    %212 = arith.mulf %203, %180 : vector<8x128xf32>
    %213 = arith.mulf %197, %205 : vector<8x128xf32>
    %214 = arith.addf %212, %213 : vector<8x128xf32>
    %215 = math.tanh %214 : vector<8x128xf32>
    %216 = arith.mulf %211, %215 : vector<8x128xf32>
    %217 = arith.index_cast %c5_i32 : i32 to index
    %c0_64 = arith.constant 0 : index
    %c0_65 = arith.constant 0 : index
    %218 = vector.load %arg11[%217, %c0_64, %c0_65] : memref<8x8x128xf32, #tpu.memory_space<vmem>>, vector<1x8x128xf32>
    %219 = vector.shape_cast %218 : vector<1x8x128xf32> to vector<8x128xf32>
    %220 = vector.shape_cast %216 : vector<8x128xf32> to vector<1x8x128xf32>
    tpu.vector_store %arg11[%217, %c0_64, %c0_65], %220 {strides = array<i32>} : memref<8x8x128xf32, #tpu.memory_space<vmem>>, vector<1x8x128xf32>,
    %c6_i32 = arith.constant 6 : i32
    %221 = arith.index_cast %c6_i32 : i32 to index
    %c0_66 = arith.constant 0 : index
    %c0_67 = arith.constant 0 : index
    %222 = vector.load %arg10[%221, %c0_66, %c0_67] : memref<8x8x512xf32, #tpu.memory_space<vmem>>, vector<1x8x512xf32>
    %223 = vector.shape_cast %222 : vector<1x8x512xf32> to vector<8x512xf32>
    %cst_68 = arith.constant dense<0.000000e+00> : vector<8x512xf32>
    %224 = tpu.matmul %216, %14, %cst_68 {dimension_numbers = #tpu.dot_dimension_numbers<[1], [0], [0], [1], [0, 0, 1, 1], [], []>} : vector<8x128xf32>, vector<128x512xf32>, vector<8x512xf32> -> vector<8x512xf32>
    %225 = arith.addf %223, %224 : vector<8x512xf32>
    %226 = vector.extract_strided_slice %225 {offsets = [0, 0], sizes = [8, 128], strides = [1, 1]} : vector<8x512xf32> to vector<8x128xf32>
    %227 = arith.negf %226 : vector<8x128xf32>
    %228 = math.exp %227 : vector<8x128xf32>
    %cst_69 = arith.constant 1.000000e+00 : f32
    %229 = vector.broadcast %cst_69 : f32 to vector<8x128xf32>
    %230 = arith.addf %229, %228 : vector<8x128xf32>
    %231 = arith.divf %229, %230 : vector<8x128xf32>
    %232 = vector.extract_strided_slice %225 {offsets = [0, 128], sizes = [8, 128], strides = [1, 1]} : vector<8x512xf32> to vector<8x128xf32>
    %233 = arith.negf %232 : vector<8x128xf32>
    %234 = math.exp %233 : vector<8x128xf32>
    %cst_70 = arith.constant 1.000000e+00 : f32
    %235 = vector.broadcast %cst_70 : f32 to vector<8x128xf32>
    %236 = arith.addf %235, %234 : vector<8x128xf32>
    %237 = arith.divf %235, %236 : vector<8x128xf32>
    %238 = vector.extract_strided_slice %225 {offsets = [0, 256], sizes = [8, 128], strides = [1, 1]} : vector<8x512xf32> to vector<8x128xf32>
    %239 = math.tanh %238 : vector<8x128xf32>
    %240 = vector.extract_strided_slice %225 {offsets = [0, 384], sizes = [8, 128], strides = [1, 1]} : vector<8x512xf32> to vector<8x128xf32>
    %241 = arith.negf %240 : vector<8x128xf32>
    %242 = math.exp %241 : vector<8x128xf32>
    %cst_71 = arith.constant 1.000000e+00 : f32
    %243 = vector.broadcast %cst_71 : f32 to vector<8x128xf32>
    %244 = arith.addf %243, %242 : vector<8x128xf32>
    %245 = arith.divf %243, %244 : vector<8x128xf32>
    %246 = arith.mulf %237, %214 : vector<8x128xf32>
    %247 = arith.mulf %231, %239 : vector<8x128xf32>
    %248 = arith.addf %246, %247 : vector<8x128xf32>
    %249 = math.tanh %248 : vector<8x128xf32>
    %250 = arith.mulf %245, %249 : vector<8x128xf32>
    %251 = arith.index_cast %c6_i32 : i32 to index
    %c0_72 = arith.constant 0 : index
    %c0_73 = arith.constant 0 : index
    %252 = vector.load %arg11[%251, %c0_72, %c0_73] : memref<8x8x128xf32, #tpu.memory_space<vmem>>, vector<1x8x128xf32>
    %253 = vector.shape_cast %252 : vector<1x8x128xf32> to vector<8x128xf32>
    %254 = vector.shape_cast %250 : vector<8x128xf32> to vector<1x8x128xf32>
    tpu.vector_store %arg11[%251, %c0_72, %c0_73], %254 {strides = array<i32>} : memref<8x8x128xf32, #tpu.memory_space<vmem>>, vector<1x8x128xf32>,
    %c7_i32 = arith.constant 7 : i32
    %255 = arith.index_cast %c7_i32 : i32 to index
    %c0_74 = arith.constant 0 : index
    %c0_75 = arith.constant 0 : index
    %256 = vector.load %arg10[%255, %c0_74, %c0_75] : memref<8x8x512xf32, #tpu.memory_space<vmem>>, vector<1x8x512xf32>
    %257 = vector.shape_cast %256 : vector<1x8x512xf32> to vector<8x512xf32>
    %cst_76 = arith.constant dense<0.000000e+00> : vector<8x512xf32>
    %258 = tpu.matmul %250, %14, %cst_76 {dimension_numbers = #tpu.dot_dimension_numbers<[1], [0], [0], [1], [0, 0, 1, 1], [], []>} : vector<8x128xf32>, vector<128x512xf32>, vector<8x512xf32> -> vector<8x512xf32>
    %259 = arith.addf %257, %258 : vector<8x512xf32>
    %260 = vector.extract_strided_slice %259 {offsets = [0, 0], sizes = [8, 128], strides = [1, 1]} : vector<8x512xf32> to vector<8x128xf32>
    %261 = arith.negf %260 : vector<8x128xf32>
    %262 = math.exp %261 : vector<8x128xf32>
    %cst_77 = arith.constant 1.000000e+00 : f32
    %263 = vector.broadcast %cst_77 : f32 to vector<8x128xf32>
    %264 = arith.addf %263, %262 : vector<8x128xf32>
    %265 = arith.divf %263, %264 : vector<8x128xf32>
    %266 = vector.extract_strided_slice %259 {offsets = [0, 128], sizes = [8, 128], strides = [1, 1]} : vector<8x512xf32> to vector<8x128xf32>
    %267 = arith.negf %266 : vector<8x128xf32>
    %268 = math.exp %267 : vector<8x128xf32>
    %cst_78 = arith.constant 1.000000e+00 : f32
    %269 = vector.broadcast %cst_78 : f32 to vector<8x128xf32>
    %270 = arith.addf %269, %268 : vector<8x128xf32>
    %271 = arith.divf %269, %270 : vector<8x128xf32>
    %272 = vector.extract_strided_slice %259 {offsets = [0, 256], sizes = [8, 128], strides = [1, 1]} : vector<8x512xf32> to vector<8x128xf32>
    %273 = math.tanh %272 : vector<8x128xf32>
    %274 = vector.extract_strided_slice %259 {offsets = [0, 384], sizes = [8, 128], strides = [1, 1]} : vector<8x512xf32> to vector<8x128xf32>
    %275 = arith.negf %274 : vector<8x128xf32>
    %276 = math.exp %275 : vector<8x128xf32>
    %cst_79 = arith.constant 1.000000e+00 : f32
    %277 = vector.broadcast %cst_79 : f32 to vector<8x128xf32>
    %278 = arith.addf %277, %276 : vector<8x128xf32>
    %279 = arith.divf %277, %278 : vector<8x128xf32>
    %280 = arith.mulf %271, %248 : vector<8x128xf32>
    %281 = arith.mulf %265, %273 : vector<8x128xf32>
    %282 = arith.addf %280, %281 : vector<8x128xf32>
    %283 = math.tanh %282 : vector<8x128xf32>
    %284 = arith.mulf %279, %283 : vector<8x128xf32>
    %285 = arith.index_cast %c7_i32 : i32 to index
    %c0_80 = arith.constant 0 : index
    %c0_81 = arith.constant 0 : index
    %286 = vector.load %arg11[%285, %c0_80, %c0_81] : memref<8x8x128xf32, #tpu.memory_space<vmem>>, vector<1x8x128xf32>
    %287 = vector.shape_cast %286 : vector<1x8x128xf32> to vector<8x128xf32>
    %288 = vector.shape_cast %284 : vector<8x128xf32> to vector<1x8x128xf32>
    tpu.vector_store %arg11[%285, %c0_80, %c0_81], %288 {strides = array<i32>} : memref<8x8x128xf32, #tpu.memory_space<vmem>>, vector<1x8x128xf32>,
    %c8_i32 = arith.constant 8 : i32
    %c0_82 = arith.constant 0 : index
    %c0_83 = arith.constant 0 : index
    %c0_84 = arith.constant 0 : index
    %289 = vector.load %arg11[%c0_82, %c0_83, %c0_84] : memref<8x8x128xf32, #tpu.memory_space<vmem>>, vector<8x8x128xf32>
    %290 = vector.shape_cast %289 : vector<8x8x128xf32> to vector<64x128xf32>
    %c0_85 = arith.constant 0 : index
    %c0_86 = arith.constant 0 : index
    %291 = vector.load %arg7[%c0_85, %c0_86] : memref<128x4xf32, #tpu.memory_space<vmem>>, vector<128x4xf32>
    %cst_87 = arith.constant dense<0.000000e+00> : vector<64x4xf32>
    %292 = tpu.matmul %290, %291, %cst_87 {dimension_numbers = #tpu.dot_dimension_numbers<[1], [0], [0], [1], [0, 0, 1, 1], [], []>} : vector<64x128xf32>, vector<128x4xf32>, vector<64x4xf32> -> vector<64x4xf32>
    %c0_88 = arith.constant 0 : index
    %c0_89 = arith.constant 0 : index
    %293 = vector.load %arg8[%c0_88, %c0_89] : memref<1x4xf32, #tpu.memory_space<vmem>>, vector<1x4xf32>
    %294 = vector.broadcast %293 : vector<1x4xf32> to vector<64x4xf32>
    %295 = arith.addf %292, %294 : vector<64x4xf32>
    %296 = vector.shape_cast %295 : vector<64x4xf32> to vector<8x8x4xf32>
    %c0_90 = arith.constant 0 : index
    %c0_91 = arith.constant 0 : index
    %c0_92 = arith.constant 0 : index
    %297 = vector.load %arg9[%c0_90, %c0_91, %c0_92] : memref<8x8x4xf32, #tpu.memory_space<vmem>>, vector<8x8x4xf32>
    tpu.vector_store %arg9[%c0_90, %c0_91, %c0_92], %296 {strides = array<i32>} : memref<8x8x4xf32, #tpu.memory_space<vmem>>, vector<8x8x4xf32>,
    return
  }
  func.func @transform_0(%arg0: i32) -> (i32, i32, i32) {
    %c0_i32 = arith.constant 0 : i32
    %c0_i32_0 = arith.constant 0 : i32
    %c0_i32_1 = arith.constant 0 : i32
    return %c0_i32, %arg0, %c0_i32_0 : i32, i32, i32
  }
  func.func @transform_1(%arg0: i32) -> (i32, i32) {
    %c0_i32 = arith.constant 0 : i32
    %c0_i32_0 = arith.constant 0 : i32
    %c0_i32_1 = arith.constant 0 : i32
    return %c0_i32, %c0_i32_0 : i32, i32
  }
  func.func @transform_2(%arg0: i32) -> (i32, i32) {
    %c0_i32 = arith.constant 0 : i32
    %c0_i32_0 = arith.constant 0 : i32
    %c0_i32_1 = arith.constant 0 : i32
    return %c0_i32, %c0_i32_0 : i32, i32
  }
  func.func @transform_3(%arg0: i32) -> (i32, i32) {
    %c0_i32 = arith.constant 0 : i32
    %c0_i32_0 = arith.constant 0 : i32
    %c0_i32_1 = arith.constant 0 : i32
    return %c0_i32, %c0_i32_0 : i32, i32
  }
  func.func @transform_4(%arg0: i32) -> (i32, i32) {
    %c0_i32 = arith.constant 0 : i32
    %c0_i32_0 = arith.constant 0 : i32
    %c0_i32_1 = arith.constant 0 : i32
    return %c0_i32, %c0_i32_0 : i32, i32
  }
  func.func @transform_5(%arg0: i32) -> (i32, i32) {
    %c0_i32 = arith.constant 0 : i32
    %c0_i32_0 = arith.constant 0 : i32
    %c0_i32_1 = arith.constant 0 : i32
    return %c0_i32, %c0_i32_0 : i32, i32
  }
  func.func @transform_6(%arg0: i32) -> (i32, i32) {
    %c0_i32 = arith.constant 0 : i32
    %c0_i32_0 = arith.constant 0 : i32
    %c0_i32_1 = arith.constant 0 : i32
    return %c0_i32, %c0_i32_0 : i32, i32
  }
  func.func @transform_7(%arg0: i32) -> (i32, i32) {
    %c0_i32 = arith.constant 0 : i32
    %c0_i32_0 = arith.constant 0 : i32
    %c0_i32_1 = arith.constant 0 : i32
    return %c0_i32, %c0_i32_0 : i32, i32
  }
  func.func @transform_8(%arg0: i32) -> (i32, i32, i32) {
    %c0_i32 = arith.constant 0 : i32
    %c0_i32_0 = arith.constant 0 : i32
    %c0_i32_1 = arith.constant 0 : i32
    return %c0_i32, %arg0, %c0_i32_0 : i32, i32, i32
  }
}

</mosaic_0001>

<bundles_post_ra>
// kernel: base_model_forward.1
= control target key start
LH: loop header
LB: loop body
LE: loop exit
PB: predicated region body
PF: predicated region fallthrough
CT: control target
= control target key end

     0   :  { %vm70_vm0 = vcmask 1043456   ;;  %vm45_vm1 = vcmask 31744   ;;  %s4146_s1 = inlined_call_operand.vmem [shape: f32[4,128], index: 1, kind: input, shape index: {}]   ;;  %s4147_s0 = inlined_call_operand.vmem [shape: f32[8,8,4], index: 0, kind: input, shape index: {}]   ;;  %s4148_s3 = inlined_call_operand.vmem [shape: f32[128,512], index: 3, kind: input, shape index: {}]   ;;  %s4149_s4 = inlined_call_operand.vmem [shape: f32[128,512], index: 4, kind: input, shape index: {}]   ;;  %s4150_s2 = inlined_call_operand.vmem [shape: f32[1,128], index: 2, kind: input, shape index: {}]   ;;  %s4151_s5 = inlined_call_operand.vmem [shape: f32[1,512], index: 5, kind: input, shape index: {}]   ;;  %s4152_s6 = inlined_call_operand.vmem [shape: f32[128,4], index: 6, kind: input, shape index: {}]   ;;  %s4153_s7 = inlined_call_operand.vmem [shape: f32[1,4], index: 7, kind: input, shape index: {}]   ;;  %s4154_s8 = inlined_call_operand.vmem [shape: f32[8,8,4], index: 8, kind: output, shape index: {}]  }
   0x1   :  { %v37_v0 = vld [vmem:[%s4146_s1] sm:$0xf]  ;;  %v30_v2 = vld [vmem:[%s4147_s0 + $0x8] sm:$0xff]  ;;  %v31_v3 = vld [vmem:[%s4147_s0 + $0x10] sm:$0xff] }
   0x2   :  { %v29_v1 = vld [vmem:[%s4147_s0] sm:$0xff]  ;;  %2217 = vmatprep.subr.msk.mxu1 %vm70_vm0, %v37_v0  ;;  %v32_v4 = vld [vmem:[%s4147_s0 + $0x18] sm:$0xff]  ;;  %v180_v6 = vld [vmem:[%s4148_s3 + $0x8] sm:$0xff] }
   0x3   :  { %2219 = vmatprep.mubr.msk.f32.mxu1 %vm45_vm1, %v29_v1  ;;  %2218 = vmatpush3.msk.msra.mxu1 %vm70_vm0, %v37_v0  ;;  %v33_v5 = vld [vmem:[%s4147_s0 + $0x20] sm:$0xff]  ;;  %v184_v7 = vld [vmem:[%s4148_s3 + $0x28] sm:$0xff]  ;;  %v35_v23 = vld [vmem:[%s4147_s0 + $0x30] sm:$0xff] }
   0x4   :  { %2220 = vmatmul.mubr.msk.f32.vlgmr.msra.gmra.mrb[0].mxu1 %vm45_vm1, %v30_v2  ;;  %v179_v8 = vld [vmem:[%s4148_s3] sm:$0xff]  ;;  %v2275_v9 = vpack.c.bf16 %v184_v7, %v180_v6  ;;  %v524_v11 = vld [vmem:[%s4149_s4 + $0x8] sm:$0xff]  ;;  %v36_v38 = vld [vmem:[%s4147_s0 + $0x38] sm:$0xff] }
   0x5   :  { %2222 = vmatprep.mubr.msk.f32.mxu1 %vm45_vm1, %v31_v3  ;;  %v183_v10 = vld [vmem:[%s4148_s3 + $0x20] sm:$0xff]  ;;  %v528_v12 = vld [vmem:[%s4149_s4 + $0x28] sm:$0xff] }
   0x6   :  { %v2277_v13 = vpack.c.bf16 %v183_v10, %v179_v8  ;;  %v3161_v14 = vpack.c.bf16 %v528_v12, %v524_v11  ;;  %v188_v15 = vld [vmem:[%s4148_s3 + $0x48] sm:$0xff]  ;;  %v523_v17 = vld [vmem:[%s4149_s4] sm:$0xff]  ;;  %2276 = vmatprep.subr.bf16.mxu0 %v2275_v9 }
   0x7   :  { %v192_v16 = vld [vmem:[%s4148_s3 + $0x68] sm:$0xff]  ;;  %v527_v20 = vld [vmem:[%s4149_s4 + $0x20] sm:$0xff] }
   0x8   :  { %v34_v18 = vld [vmem:[%s4147_s0 + $0x28] sm:$0xff]  ;;  %v2279_v19 = vpack.c.bf16 %v192_v16, %v188_v15  ;;  %v187_v21 = vld [vmem:[%s4148_s3 + $0x40] sm:$0xff]  ;;  %2223 = vmatmul.mubr.msk.f32.gmra.mrb[2].mxu1 %vm45_vm1, %v32_v4  ;;  %2278 = vmatpush1.bf16.msra.mxu0 %v2277_v13  ;;  %v3188_v24 = vpack.c.bf16 %v527_v20, %v523_v17 }
   0x9   :  { %v191_v22 = vld [vmem:[%s4148_s3 + $0x60] sm:$0xff]  ;;  %v532_v26 = vld [vmem:[%s4149_s4 + $0x48] sm:$0xff]  ;;  %2225 = vmatprep.mubr.msk.f32.mxu1 %vm45_vm1, %v33_v5  ;;  %2340 = vmatprep.subr.bf16.mxu1 %v3161_v14 }
   0xa   :  { %v2281_v25 = vpack.c.bf16 %v191_v22, %v187_v21  ;;  %v536_v27 = vld [vmem:[%s4149_s4 + $0x68] sm:$0xff]  ;;  %v531_v31 = vld [vmem:[%s4149_s4 + $0x40] sm:$0xff]  ;;  %2280 = vmatprep.subr.bf16.mxu0 %v2279_v19  ;;  %2342 = vmatpush1.bf16.msra.mxu1 %v3188_v24 }
   0xb   :  { %v196_v28 = vld [vmem:[%s4148_s3 + $0x88] sm:$0xff]  ;;  %v3201_v29 = vpack.c.bf16 %v536_v27, %v532_v26  ;;  %v535_v32 = vld [vmem:[%s4149_s4 + $0x60] sm:$0xff] }
   0xc   :  { %v200_v30 = vld [vmem:[%s4148_s3 + $0xa8] sm:$0xff]  ;;  %v3213_v34 = vpack.c.bf16 %v535_v32, %v531_v31  ;;  %v195_v35 = vld [vmem:[%s4148_s3 + $0x80] sm:$0xff]  ;;  %2226 = vmatmul.mubr.msk.f32.gmra.mrb[4].mxu1 %vm45_vm1, %v34_v18  ;;  %2282 = vmatpush1.bf16.msra.mxu0 %v2281_v25 }
   0xd   :  { %v2283_v33 = vpack.c.bf16 %v200_v30, %v196_v28  ;;  %v199_v36 = vld [vmem:[%s4148_s3 + $0xa0] sm:$0xff]  ;;  %v540_v37 = vld [vmem:[%s4149_s4 + $0x88] sm:$0xff]  ;;  %2344 = vmatprep.subr.bf16.mxu1 %v3201_v29  ;;  %2228 = vmatprep.mubr.msk.f32.mxu1 %vm45_vm1, %v35_v23 }
   0xe   :  { %v544_v39 = vld [vmem:[%s4149_s4 + $0xa8] sm:$0xff]  ;;  %v2285_v42 = vpack.c.bf16 %v199_v36, %v195_v35  ;;  %v539_v44 = vld [vmem:[%s4149_s4 + $0x80] sm:$0xff]  ;;  %2346 = vmatpush1.bf16.msra.mxu1 %v3213_v34 }
   0xf   :  { %v204_v40 = vld [vmem:[%s4148_s3 + $0xc8] sm:$0xff]  ;;  %v3238_v43 = vpack.c.bf16 %v544_v39, %v540_v37  ;;  %v543_v45 = vld [vmem:[%s4149_s4 + $0xa0] sm:$0xff]  ;;  %2284 = vmatprep.subr.bf16.mxu0 %v2283_v33 }
  0x10   :  { %v208_v41 = vld [vmem:[%s4148_s3 + $0xe8] sm:$0xff]  ;;  %v203_v46 = vld [vmem:[%s4148_s3 + $0xc0] sm:$0xff]  ;;  %v3260_v51 = vpack.c.bf16 %v543_v45, %v539_v44  ;;  %2229 = vmatmul.mubr.msk.f32.gmra.mrb[6].mxu1 %vm45_vm1, %v36_v38  ;;  %2286 = vmatpush1.bf16.msra.mxu0 %v2285_v42  ;;  %v182_v45 = vld [vmem:[%s4148_s3 + $0x18] sm:$0xff] }
  0x11   :  { %v2287_v47 = vpack.c.bf16 %v208_v41, %v204_v40  ;;  %v207_v48 = vld [vmem:[%s4148_s3 + $0xe0] sm:$0xff]  ;;  %v548_v49 = vld [vmem:[%s4149_s4 + $0xc8] sm:$0xff]  ;;  %2348 = vmatprep.subr.bf16.mxu1 %v3238_v43 }
  0x12   :  { %v552_v50 = vld [vmem:[%s4149_s4 + $0xe8] sm:$0xff]  ;;  %v547_v55 = vld [vmem:[%s4149_s4 + $0xc0] sm:$0xff]  ;;  %v2289_v57 = vpack.c.bf16 %v207_v48, %v203_v46  ;;  %2350 = vmatpush1.bf16.msra.mxu1 %v3260_v51  ;;  %v186_v46 = vld [vmem:[%s4148_s3 + $0x38] sm:$0xff] }
  0x13   :  { %v212_v52 = vld [vmem:[%s4148_s3 + $0x108] sm:$0xff]  ;;  %v3269_v54 = vpack.c.bf16 %v552_v50, %v548_v49  ;;  %v551_v56 = vld [vmem:[%s4149_s4 + $0xe0] sm:$0xff]  ;;  %2288 = vmatprep.subr.bf16.mxu0 %v2287_v47  ;;  %v2307_v48 = vpack.c.bf16 %v186_v46, %v182_v45  ;;  %v4155_v49 = vmov 0.0   ;;  %v181_v50 = vld [vmem:[%s4148_s3 + $0x10] sm:$0xff] }
  0x14   :  { %v216_v53 = vld [vmem:[%s4148_s3 + $0x128] sm:$0xff]  ;;  %v211_v61 = vld [vmem:[%s4148_s3 + $0x100] sm:$0xff]  ;;  %v3291_v63 = vpack.c.bf16 %v551_v56, %v547_v55  ;;  %2290 = vmatpush1.bf16.msra.mxu0 %v2289_v57  ;;  %329 = vmatprep.mubr.f32.mxu0 %v4155_v49  ;;  %v190_v55 = vld [vmem:[%s4148_s3 + $0x58] sm:$0xff] }
  0x15   :  { %v556_v58 = vld [vmem:[%s4149_s4 + $0x108] sm:$0xff]  ;;  %v2291_v60 = vpack.c.bf16 %v216_v53, %v212_v52  ;;  %v215_v62 = vld [vmem:[%s4148_s3 + $0x120] sm:$0xff]  ;;  %2352 = vmatprep.subr.bf16.mxu1 %v3269_v54  ;;  %655 = vmatprep.mubr.f32.mxu1 %v4155_v49  ;;  %v185_v52 = vld [vmem:[%s4148_s3 + $0x30] sm:$0xff] }
  0x16   :  { %v560_v59 = vld [vmem:[%s4149_s4 + $0x128] sm:$0xff]  ;;  %v555_v3 = vld [vmem:[%s4149_s4 + $0x100] sm:$0xff]  ;;  %v2293_v5 = vpack.c.bf16 %v215_v62, %v211_v61  ;;  %2354 = vmatpush1.bf16.msra.mxu1 %v3291_v63  ;;  %v194_v56 = vld [vmem:[%s4148_s3 + $0x78] sm:$0xff] }
  0x17   :  { %v220_v0 = vld [vmem:[%s4148_s3 + $0x148] sm:$0xff]  ;;  %v3300_v2 = vpack.c.bf16 %v560_v59, %v556_v58  ;;  %v559_v4 = vld [vmem:[%s4149_s4 + $0x120] sm:$0xff]  ;;  %2292 = vmatprep.subr.bf16.mxu0 %v2291_v60  ;;  %v2309_v59 = vpack.c.bf16 %v185_v52, %v181_v50  ;;  %v2311_v61 = vpack.c.bf16 %v194_v56, %v190_v55  ;;  %v189_v62 = vld [vmem:[%s4148_s3 + $0x50] sm:$0xff] }
  0x18   :  { %v224_v1 = vld [vmem:[%s4148_s3 + $0x168] sm:$0xff]  ;;  %v219_v9 = vld [vmem:[%s4148_s3 + $0x140] sm:$0xff]  ;;  %v3321_v11 = vpack.c.bf16 %v559_v4, %v555_v3  ;;  %2294 = vmatpush1.bf16.msra.mxu0 %v2293_v5  ;;  %v202_v3 = vld [vmem:[%s4148_s3 + $0xb8] sm:$0xff] }
  0x19   :  { %v564_v6 = vld [vmem:[%s4149_s4 + $0x148] sm:$0xff]  ;;  %v2295_v8 = vpack.c.bf16 %v224_v1, %v220_v0  ;;  %v223_v10 = vld [vmem:[%s4148_s3 + $0x160] sm:$0xff]  ;;  %2356 = vmatprep.subr.bf16.mxu1 %v3300_v2  ;;  %v193_v0 = vld [vmem:[%s4148_s3 + $0x70] sm:$0xff] }
  0x1a   :  { %v568_v7 = vld [vmem:[%s4149_s4 + $0x168] sm:$0xff]  ;;  %v563_v16 = vld [vmem:[%s4149_s4 + $0x140] sm:$0xff]  ;;  %v2297_v18 = vpack.c.bf16 %v223_v10, %v219_v9  ;;  %2358 = vmatpush1.bf16.msra.mxu1 %v3321_v11  ;;  %v198_v1 = vld [vmem:[%s4148_s3 + $0x98] sm:$0xff] }
  0x1b   :  { %v228_v12 = vld [vmem:[%s4148_s3 + $0x188] sm:$0xff]  ;;  %v3330_v15 = vpack.c.bf16 %v568_v7, %v564_v6  ;;  %v567_v17 = vld [vmem:[%s4149_s4 + $0x160] sm:$0xff]  ;;  %2296 = vmatprep.subr.bf16.mxu0 %v2295_v8  ;;  %v2313_v6 = vpack.c.bf16 %v193_v0, %v189_v62  ;;  %v2315_v8 = vpack.c.bf16 %v202_v3, %v198_v1  ;;  %v197_v9 = vld [vmem:[%s4148_s3 + $0x90] sm:$0xff] }
  0x1c   :  { %v232_v13 = vld [vmem:[%s4148_s3 + $0x1a8] sm:$0xff]  ;;  %v227_v22 = vld [vmem:[%s4148_s3 + $0x180] sm:$0xff]  ;;  %v3351_v25 = vpack.c.bf16 %v567_v17, %v563_v16  ;;  %2298 = vmatpush1.bf16.msra.mxu0 %v2297_v18  ;;  %v201_v10 = vld [vmem:[%s4148_s3 + $0xb0] sm:$0xff] }
  0x1d   :  { %v572_v19 = vld [vmem:[%s4149_s4 + $0x188] sm:$0xff]  ;;  %v2299_v21 = vpack.c.bf16 %v232_v13, %v228_v12  ;;  %v231_v23 = vld [vmem:[%s4148_s3 + $0x1a0] sm:$0xff]  ;;  %2360 = vmatprep.subr.bf16.mxu1 %v3330_v15  ;;  %v206_v12 = vld [vmem:[%s4148_s3 + $0xd8] sm:$0xff]  ;;  %v2317_v18 = vpack.c.bf16 %v201_v10, %v197_v9 }
  0x1e   :  { %v576_v20 = vld [vmem:[%s4149_s4 + $0x1a8] sm:$0xff]  ;;  %v571_v30 = vld [vmem:[%s4149_s4 + $0x180] sm:$0xff]  ;;  %v2301_v32 = vpack.c.bf16 %v231_v23, %v227_v22  ;;  %2362 = vmatpush1.bf16.msra.mxu1 %v3351_v25  ;;  %v210_v13 = vld [vmem:[%s4148_s3 + $0xf8] sm:$0xff] }
  0x1f   :  { %v236_v26 = vld [vmem:[%s4148_s3 + $0x1c8] sm:$0xff]  ;;  %v3360_v28 = vpack.c.bf16 %v576_v20, %v572_v19  ;;  %v575_v31 = vld [vmem:[%s4149_s4 + $0x1a0] sm:$0xff]  ;;  %2300 = vmatprep.subr.bf16.mxu0 %v2299_v21  ;;  %v2319_v20 = vpack.c.bf16 %v210_v13, %v206_v12  ;;  %v205_v21 = vld [vmem:[%s4148_s3 + $0xd0] sm:$0xff] }
  0x20   :  { %v240_v27 = vld [vmem:[%s4148_s3 + $0x1e8] sm:$0xff]  ;;  %v3369_v35 = vpack.c.bf16 %v575_v31, %v571_v30  ;;  %2302 = vmatpush1.bf16.msra.mxu0 %v2301_v32  ;;  %v235_v36 = vld [vmem:[%s4148_s3 + $0x1c0] sm:$0xff]  ;;  %v209_v22 = vld [vmem:[%s4148_s3 + $0xf0] sm:$0xff] }
  0x21   :  { %v2303_v33 = vpack.c.bf16 %v240_v27, %v236_v26  ;;  %2364 = vmatprep.subr.bf16.mxu1 %v3360_v28  ;;  %v239_v37 = vld [vmem:[%s4148_s3 + $0x1e0] sm:$0xff]  ;;  %v580_v39 = vld [vmem:[%s4149_s4 + $0x1c8] sm:$0xff]  ;;  %v214_v23 = vld [vmem:[%s4148_s3 + $0x118] sm:$0xff]  ;;  %v2321_v30 = vpack.c.bf16 %v209_v22, %v205_v21 }
  0x22   :  { %2366 = vmatpush1.bf16.msra.mxu1 %v3369_v35  ;;  %v2305_v38 = vpack.c.bf16 %v239_v37, %v235_v36  ;;  %v584_v40 = vld [vmem:[%s4149_s4 + $0x1e8] sm:$0xff]  ;;  %v579_v42 = vld [vmem:[%s4149_s4 + $0x1c0] sm:$0xff]  ;;  %v218_v26 = vld [vmem:[%s4148_s3 + $0x138] sm:$0xff] }
  0x23   :  { %2304 = vmatprep.subr.bf16.mxu0 %v2303_v33  ;;  %v3385_v41 = vpack.c.bf16 %v584_v40, %v580_v39  ;;  %v583_v44 = vld [vmem:[%s4149_s4 + $0x1e0] sm:$0xff]  ;;  %v2323_v33 = vpack.c.bf16 %v218_v26, %v214_v23  ;;  %v213_v36 = vld [vmem:[%s4148_s3 + $0x110] sm:$0xff]  ;;  %v226_v39 = vld [vmem:[%s4148_s3 + $0x178] sm:$0xff] }
  0x24   :  { %2306 = vmatpush1.bf16.msra.mxu0 %v2305_v38  ;;  %v3399_v47 = vpack.c.bf16 %v583_v44, %v579_v42  ;;  %v3433_v53 = vld [vmem:[%s4150_s2] ss:$0 sm:$0xff]  ;;  %v217_v37 = vld [vmem:[%s4148_s3 + $0x130] sm:$0xff]  ;;  %v222_v38 = vld [vmem:[%s4148_s3 + $0x158] sm:$0xff] }
  0x25   :  { %2368 = vmatprep.subr.bf16.mxu1 %v3385_v41  ;;  %2308 = vmatprep.subr.bf16.mxu0 %v2307_v48  ;;  %v2325_v42 = vpack.c.bf16 %v217_v37, %v213_v36  ;;  %v2327_v44 = vpack.c.bf16 %v226_v39, %v222_v38  ;;  %v221_v45 = vld [vmem:[%s4148_s3 + $0x150] sm:$0xff]  ;;  %v230_v48 = vld [vmem:[%s4148_s3 + $0x198] sm:$0xff] }
  0x26   :  { %2370 = vmatpush1.bf16.msra.mxu1 %v3399_v47  ;;  %v225_v46 = vld [vmem:[%s4148_s3 + $0x170] sm:$0xff]  ;;  %v234_v50 = vld [vmem:[%s4148_s3 + $0x1b8] sm:$0xff] }
  0x27   :  { %2404 = vmatprep.subr.bf16.mxu1 %v3161_v14  ;;  %v2329_v52 = vpack.c.bf16 %v225_v46, %v221_v45  ;;  %v2331_v56 = vpack.c.bf16 %v234_v50, %v230_v48  ;;  %v237_v3 = vld [vmem:[%s4148_s3 + $0x1d0] sm:$0xff]  ;;  %v542_v22 = vld [vmem:[%s4149_s4 + $0x98] sm:$0xff] }
  0x28   :  { %v525_v12 = vld [vmem:[%s4149_s4 + $0x10] sm:$0xff]  ;;  %v546_v23 = vld [vmem:[%s4149_s4 + $0xb8] sm:$0xff] }
  0x29   :  { %656 = vmatmul.mubr.f32.vlgmr.msra.gmra.mrb[8].mxu1 %v4155_v49  ;;  %v529_v13 = vld [vmem:[%s4149_s4 + $0x30] sm:$0xff]  ;;  %v570_v50 = vld [vmem:[%s4149_s4 + $0x178] sm:$0xff] }
  0x2a   :  { %2406 = vmatpush1.bf16.msra.mxu1 %v3188_v24  ;;  %831 = vmatprep.mubr.f32.mxu1 %v4155_v49  ;;  %v537_v21 = vld [vmem:[%s4149_s4 + $0x70] sm:$0xff] }
  0x2b   :  { %2408 = vmatprep.subr.bf16.mxu1 %v3201_v29  ;;  %v549_v38 = vld [vmem:[%s4149_s4 + $0xd0] sm:$0xff] }
  0x2c   :  { %v553_v39 = vld [vmem:[%s4149_s4 + $0xf0] sm:$0xff] }
  0x2d   :  { %v557_v46 = vld [vmem:[%s4149_s4 + $0x110] sm:$0xff] }
  0x2e   :  { %2410 = vmatpush1.bf16.msra.mxu1 %v3213_v34  ;;  %v561_v48 = vld [vmem:[%s4149_s4 + $0x130] sm:$0xff] }
  0x2f   :  { %2412 = vmatprep.subr.bf16.mxu1 %v3238_v43 }
  0x32   :  { %2414 = vmatpush1.bf16.msra.mxu1 %v3260_v51 }
  0x33   :  { %2416 = vmatprep.subr.bf16.mxu1 %v3269_v54 }
  0x36   :  { %2418 = vmatpush1.bf16.msra.mxu1 %v3291_v63 }
  0x37   :  { %2420 = vmatprep.subr.bf16.mxu1 %v3300_v2 }
  0x3a   :  { %2422 = vmatpush1.bf16.msra.mxu1 %v3321_v11 }
  0x3b   :  { %2424 = vmatprep.subr.bf16.mxu1 %v3330_v15 }
  0x3e   :  { %2426 = vmatpush1.bf16.msra.mxu1 %v3351_v25 }
  0x3f   :  { %2428 = vmatprep.subr.bf16.mxu1 %v3360_v28 }
  0x42   :  { %2430 = vmatpush1.bf16.msra.mxu1 %v3369_v35 }
  0x43   :  { %2432 = vmatprep.subr.bf16.mxu1 %v3385_v41 }
  0x46   :  { %2434 = vmatpush1.bf16.msra.mxu1 %v3399_v47 }
  0x47   :  { %2468 = vmatprep.subr.bf16.mxu1 %v3161_v14 }
  0xd7   :  { %v2221_v57 = vpop.f32.mrb[0].mxu1 }
  0xd8   :  { %v140_v58 = vpop.f32.mrb[1].mxu1  ;;  %v3459_v7 = vadd.f32 %v2221_v57, %v3433_v53  ;;  %v229_v57 = vld [vmem:[%s4148_s3 + $0x190] sm:$0xff] }
  0xd9   :  { %v3442_v60 = vadd.f32 %v3433_v53, %v140_v58  ;;  %v233_v58 = vld [vmem:[%s4148_s3 + $0x1b0] sm:$0xff] }
  0xda   :  { %v2333_v0 = vpack.c.bf16 %v233_v58, %v229_v57  ;;  %v565_v57 = vld [vmem:[%s4149_s4 + $0x150] sm:$0xff] }
  0xdb   :  { %330 = vmatmul.mubr.f32.vlgmr.msra.gmra.mrb[0].mxu0 %v3442_v60  ;;  %v2224_v4 = vpop.f32.mrb[2].mxu1  ;;  %v569_v58 = vld [vmem:[%s4149_s4 + $0x170] sm:$0xff] }
  0xdc   :  { %2310 = vmatpush1.bf16.msra.mxu0 %v2309_v59  ;;  %335 = vmatprep.mubr.f32.mxu0 %v4155_v49  ;;  %v150_v5 = vpop.f32.mrb[3].mxu1  ;;  %v3493_v32 = vadd.f32 %v2224_v4, %v3433_v53  ;;  %v238_v59 = vld [vmem:[%s4148_s3 + $0x1d8] sm:$0xff]  ;;  %v241_v4 = vld [vmem:[%s4148_s3 + $0x1f0] sm:$0xff] }
  0xdd   :  { %2312 = vmatprep.subr.bf16.mxu0 %v2311_v61  ;;  %v3474_v16 = vadd.f32 %v3433_v53, %v150_v5  ;;  %v242_v61 = vld [vmem:[%s4148_s3 + $0x1f8] sm:$0xff] }
  0xde   :  { %v2335_v1 = vpack.c.bf16 %v242_v61, %v238_v59  ;;  %v526_v5 = vld [vmem:[%s4149_s4 + $0x18] sm:$0xff]  ;;  %v3679_v61 = vpack.c.bf16 %v569_v58, %v565_v57 }
  0xdf   :  { %336 = vmatmul.mubr.f32.gmra.mrb[2].mxu0 %v3459_v7  ;;  %v2227_v17 = vpop.f32.mrb[4].mxu1  ;;  %v578_v59 = vld [vmem:[%s4149_s4 + $0x1b8] sm:$0xff] }
  0xe0   :  { %2314 = vmatpush1.bf16.msra.mxu0 %v2313_v6  ;;  %341 = vmatprep.mubr.f32.mxu0 %v4155_v49  ;;  %v160_v19 = vpop.f32.mrb[5].mxu1  ;;  %v3527_v55 = vadd.f32 %v2227_v17, %v3433_v53  ;;  %v530_v6 = vld [vmem:[%s4149_s4 + $0x38] sm:$0xff] }
  0xe1   :  { %2316 = vmatprep.subr.bf16.mxu0 %v2315_v8  ;;  %v3508_v40 = vadd.f32 %v3433_v53, %v160_v19  ;;  %v2337_v8 = vpack.c.bf16 %v241_v4, %v237_v3  ;;  %v3563_v10 = vpack.c.bf16 %v530_v6, %v526_v5  ;;  %v534_v17 = vld [vmem:[%s4149_s4 + $0x58] sm:$0xff]  ;;  %v577_v3 = vld [vmem:[%s4149_s4 + $0x1b0] sm:$0xff] }
  0xe2   :  { %v586_v4 = vld [vmem:[%s4149_s4 + $0x1f8] sm:$0xff] }
  0xe3   :  { %342 = vmatmul.mubr.f32.gmra.mrb[4].mxu0 %v3474_v16  ;;  %v2230_v27 = vpop.f32.mrb[6].mxu1 }
  0xe4   :  { %2318 = vmatpush1.bf16.msra.mxu0 %v2317_v18  ;;  %347 = vmatprep.mubr.f32.mxu0 %v4155_v49  ;;  %v170_v31 = vpop.f32.mrb[7].mxu1  ;;  %v3561_v9 = vadd.f32 %v2230_v27, %v3433_v53  ;;  %v3579_v18 = vpack.c.bf16 %v529_v13, %v525_v12  ;;  %v3602_v27 = vpack.c.bf16 %v546_v23, %v542_v22  ;;  %v585_v12 = vld [vmem:[%s4149_s4 + $0x1f0] sm:$0xff]  ;;  %v245_v13 = vlaneseq }
  0xe5   :  { %2320 = vmatprep.subr.bf16.mxu0 %v2319_v20  ;;  %v3542_v62 = vadd.f32 %v3433_v53, %v170_v31  ;;  %v538_v53 = vld [vmem:[%s4149_s4 + $0x78] sm:$0xff]  ;;  %v533_v20 = vld [vmem:[%s4149_s4 + $0x50] sm:$0xff] }
  0xe6   :  { %v3582_v19 = vpack.c.bf16 %v538_v53, %v534_v17  ;;  %v3599_v26 = vpack.c.bf16 %v537_v21, %v533_v20  ;;  %v545_v31 = vld [vmem:[%s4149_s4 + $0xb0] sm:$0xff]  ;;  %v246_v17 = vshrl.u32 %v245_v13, 7  ;;  %v243_v20 = vld [vmem:[%s4151_s5] sm:$0xf] }
  0xe7   :  { %348 = vmatmul.mubr.f32.gmra.mrb[6].mxu0 %v3493_v32 }
  0xe8   :  { %2322 = vmatpush1.bf16.msra.mxu0 %v2321_v30  ;;  %353 = vmatprep.mubr.f32.mxu0 %v4155_v49  ;;  %v541_v30 = vld [vmem:[%s4149_s4 + $0x90] sm:$0xff]  ;;  %v247_v53 = vsub.s32 0, %v246_v17  ;;  %v251_v21 = vsub.s32 1, %v246_v17 }
  0xe9   :  { %2324 = vmatprep.subr.bf16.mxu0 %v2323_v33  ;;  %v554_v33 = vld [vmem:[%s4149_s4 + $0xf8] sm:$0xff]  ;;  %v3619_v36 = vpack.c.bf16 %v545_v31, %v541_v30 }
  0xea   :  { %v248_v22 = vrot.slane %v243_v20, %v247_v53  ;;  %v252_v23 = vrot.slane %v243_v20, %v251_v21 }
  0xeb   :  { %354 = vmatmul.mubr.f32.gmra.mrb[8].mxu0 %v3508_v40 }
  0xec   :  { %2326 = vmatpush1.bf16.msra.mxu0 %v2325_v42  ;;  %359 = vmatprep.mubr.f32.mxu0 %v4155_v49  ;;  %v562_v42 = vld [vmem:[%s4149_s4 + $0x138] sm:$0xff] }
  0xed   :  { %2328 = vmatprep.subr.bf16.mxu0 %v2327_v44  ;;  %v3639_v44 = vpack.c.bf16 %v553_v39, %v549_v38 }
  0xef   :  { %360 = vmatmul.mubr.f32.gmra.mrb[10].mxu0 %v3527_v55 }
  0xf0   :  { %2330 = vmatpush1.bf16.msra.mxu0 %v2329_v52  ;;  %365 = vmatprep.mubr.f32.mxu0 %v4155_v49  ;;  %v3659_v52 = vpack.c.bf16 %v561_v48, %v557_v46 }
  0xf1   :  { %2332 = vmatprep.subr.bf16.mxu0 %v2331_v56 }
  0xf3   :  { %366 = vmatmul.mubr.f32.gmra.mrb[12].mxu0 %v3542_v62 }
  0xf4   :  { %2334 = vmatpush1.bf16.msra.mxu0 %v2333_v0  ;;  %371 = vmatprep.mubr.f32.mxu0 %v4155_v49 }
  0xf5   :  { %2336 = vmatprep.subr.bf16.mxu0 %v2335_v1  ;;  %v573_v1 = vld [vmem:[%s4149_s4 + $0x190] sm:$0xff] }
  0xf6   :  { %v3699_v5 = vpack.c.bf16 %v577_v3, %v573_v1 }
  0xf7   :  { %372 = vmatmul.mubr.f32.gmra.mrb[14].mxu0 %v3561_v9 }
  0xf8   :  { %2338 = vmatpush1.bf16.msra.mxu0 %v2337_v8  ;;  %442 = vmatprep.mubr.f32.mxu0 %v4155_v49  ;;  %v581_v8 = vld [vmem:[%s4149_s4 + $0x1d0] sm:$0xff] }
  0xf9   :  { %2372 = vmatprep.subr.bf16.mxu0 %v3563_v10 }
  0xfb   :  { %443 = vmatmul.mubr.f32.vlgmr.msra.gmra.mrb[16].mxu0 %v3442_v60  ;;  %v550_v60 = vld [vmem:[%s4149_s4 + $0xd8] sm:$0xff] }
  0xfc   :  { %2374 = vmatpush1.bf16.msra.mxu0 %v3579_v18  ;;  %448 = vmatprep.mubr.f32.mxu0 %v4155_v49  ;;  %v3622_v37 = vpack.c.bf16 %v554_v33, %v550_v60 }
  0xfd   :  { %2376 = vmatprep.subr.bf16.mxu0 %v3582_v19 }
  0xff   :  { %449 = vmatmul.mubr.f32.gmra.mrb[18].mxu0 %v3459_v7  ;;  %v558_v7 = vld [vmem:[%s4149_s4 + $0x118] sm:$0xff] }
 0x100   :  { %2378 = vmatpush1.bf16.msra.mxu0 %v3599_v26  ;;  %454 = vmatprep.mubr.f32.mxu0 %v4155_v49  ;;  %v3642_v45 = vpack.c.bf16 %v562_v42, %v558_v7 }
 0x101   :  { %2380 = vmatprep.subr.bf16.mxu0 %v3602_v27 }
 0x103   :  { %455 = vmatmul.mubr.f32.gmra.mrb[20].mxu0 %v3474_v16  ;;  %v566_v16 = vld [vmem:[%s4149_s4 + $0x158] sm:$0xff] }
 0x104   :  { %2382 = vmatpush1.bf16.msra.mxu0 %v3619_v36  ;;  %460 = vmatprep.mubr.f32.mxu0 %v4155_v49  ;;  %v3662_v56 = vpack.c.bf16 %v570_v50, %v566_v16 }
 0x105   :  { %2384 = vmatprep.subr.bf16.mxu0 %v3622_v37 }
 0x107   :  { %461 = vmatmul.mubr.f32.gmra.mrb[22].mxu0 %v3493_v32  ;;  %v574_v32 = vld [vmem:[%s4149_s4 + $0x198] sm:$0xff] }
 0x108   :  { %2386 = vmatpush1.bf16.msra.mxu0 %v3639_v44  ;;  %466 = vmatprep.mubr.f32.mxu0 %v4155_v49  ;;  %v3682_v0 = vpack.c.bf16 %v578_v59, %v574_v32 }
 0x109   :  { %2388 = vmatprep.subr.bf16.mxu0 %v3642_v45 }
 0x10b   :  { %467 = vmatmul.mubr.f32.gmra.mrb[24].mxu0 %v3508_v40  ;;  %v582_v40 = vld [vmem:[%s4149_s4 + $0x1d8] sm:$0xff] }
 0x10c   :  { %2390 = vmatpush1.bf16.msra.mxu0 %v3659_v52  ;;  %472 = vmatprep.mubr.f32.mxu0 %v4155_v49  ;;  %v3702_v6 = vpack.c.bf16 %v586_v4, %v582_v40 }
 0x10d   :  { %2392 = vmatprep.subr.bf16.mxu0 %v3662_v56 }
 0x10f   :  { %473 = vmatmul.mubr.f32.gmra.mrb[26].mxu0 %v3527_v55  ;;  %v3713_v55 = vpack.c.bf16 %v585_v12, %v581_v8 }
 0x110   :  { %2394 = vmatpush1.bf16.msra.mxu0 %v3679_v61  ;;  %478 = vmatprep.mubr.f32.mxu0 %v4155_v49 }
 0x111   :  { %2396 = vmatprep.subr.bf16.mxu0 %v3682_v0 }
 0x113   :  { %479 = vmatmul.mubr.f32.gmra.mrb[28].mxu0 %v3542_v62  ;;  %v657_v62 = vpop.f32.mrb[8].mxu1 }
 0x114   :  { %2398 = vmatpush1.bf16.msra.mxu0 %v3699_v5  ;;  %484 = vmatprep.mubr.f32.mxu0 %v4155_v49 }
 0x115   :  { %2400 = vmatprep.subr.bf16.mxu0 %v3702_v6 }
 0x117   :  { %485 = vmatmul.mubr.f32.gmra.mrb[30].mxu0 %v3561_v9  ;;  %v659_v9 = vpop.f32.mrb[9].mxu1 }
 0x118   :  { %2402 = vmatpush1.bf16.msra.mxu0 %v3713_v55  ;;  %726 = vmatprep.mubr.f32.mxu0 %v4155_v49 }
 0x119   :  { %2436 = vmatprep.subr.bf16.mxu0 %v3563_v10 }
 0x11b   :  { %727 = vmatmul.mubr.f32.vlgmr.msra.gmra.mrb[16].mxu0 %v4155_v49 }
 0x11c   :  { %2438 = vmatpush1.bf16.msra.mxu0 %v3579_v18  ;;  %902 = vmatprep.mubr.f32.mxu0 %v4155_v49 }
 0x11d   :  { %2440 = vmatprep.subr.bf16.mxu0 %v3582_v19 }
 0x120   :  { %2442 = vmatpush1.bf16.msra.mxu0 %v3599_v26 }
 0x121   :  { %2444 = vmatprep.subr.bf16.mxu0 %v3602_v27 }
 0x124   :  { %2446 = vmatpush1.bf16.msra.mxu0 %v3619_v36 }
 0x125   :  { %2448 = vmatprep.subr.bf16.mxu0 %v3622_v37 }
 0x128   :  { %2450 = vmatpush1.bf16.msra.mxu0 %v3639_v44 }
 0x129   :  { %2452 = vmatprep.subr.bf16.mxu0 %v3642_v45 }
 0x12c   :  { %2454 = vmatpush1.bf16.msra.mxu0 %v3659_v52 }
 0x12d   :  { %2456 = vmatprep.subr.bf16.mxu0 %v3662_v56 }
 0x130   :  { %2458 = vmatpush1.bf16.msra.mxu0 %v3679_v61 }
 0x131   :  { %2460 = vmatprep.subr.bf16.mxu0 %v3682_v0 }
 0x134   :  { %2462 = vmatpush1.bf16.msra.mxu0 %v3699_v5 }
 0x135   :  { %2464 = vmatprep.subr.bf16.mxu0 %v3702_v6 }
 0x138   :  { %2466 = vmatpush1.bf16.msra.mxu0 %v3713_v55 }
 0x139   :  { %2500 = vmatprep.subr.bf16.mxu0 %v3563_v10 }
 0x1ae   :  { %v331_v30 = vpop.f32.mrb[0].mxu0 }
 0x1af   :  { %v332_v31 = vadd.f32 %v331_v30, %v248_v22  ;;  %v333_v60 = vpop.f32.mrb[1].mxu0 }
 0x1b0   :  { %v334_v33 = vadd.f32 %v333_v60, %v252_v23 }
 0x1b1   :  { %v733_v38 = vadd.f32 %v657_v62, %v332_v31 }
 0x1b2   :  { %v734_v39 = vadd.f32 %v659_v9, %v334_v33  ;;  %v337_v7 = vpop.f32.mrb[2].mxu0 }
 0x1b3   :  { %v3741_v42 = vadd.f32 %v337_v7, %v248_v22  ;;  %v339_v46 = vpop.f32.mrb[3].mxu0 }
 0x1b4   :  { %v3743_v48 = vadd.f32 %v339_v46, %v252_v23 }
 0x1b6   :  { %v343_v16 = vpop.f32.mrb[4].mxu0 }
 0x1b7   :  { %v3745_v50 = vadd.f32 %v343_v16, %v248_v22  ;;  %v345_v57 = vpop.f32.mrb[5].mxu0 }
 0x1b8   :  { %v3747_v58 = vadd.f32 %v345_v57, %v252_v23  ;;  %v2160_v57 = vmul.f32 -1.442695, %v734_v39 }
 0x1ba   :  { %v349_v32 = vpop.f32.mrb[6].mxu0  ;;  %2948 = vpow2.f32 %v2160_v57 }
 0x1bb   :  { %v3749_v59 = vadd.f32 %v349_v32, %v248_v22  ;;  %v351_v1 = vpop.f32.mrb[7].mxu0  ;;  %v2159_v32 = vmul.f32 -1.442695, %v733_v38 }
 0x1bc   :  { %v3751_v3 = vadd.f32 %v351_v1, %v252_v23  ;;  %v255_v1 = vsub.s32 2, %v246_v17 }
 0x1bd   :  { %2950 = vpow2.f32 %v2159_v32 }
 0x1be   :  { %v355_v40 = vpop.f32.mrb[8].mxu0 }
 0x1bf   :  { %v3753_v4 = vadd.f32 %v355_v40, %v248_v22  ;;  %v357_v8 = vpop.f32.mrb[9].mxu0 }
 0x1c0   :  { %v3755_v12 = vadd.f32 %v357_v8, %v252_v23  ;;  %v259_v8 = vsub.s32 3, %v246_v17 }
 0x1c2   :  { %v361_v62 = vpop.f32.mrb[10].mxu0 }
 0x1c3   :  { %v3757_v9 = vadd.f32 %v361_v62, %v248_v22  ;;  %v363_v13 = vpop.f32.mrb[11].mxu0 }
 0x1c4   :  { %v3759_v53 = vadd.f32 %v363_v13, %v252_v23  ;;  %v2949_v40 = vpop.eup %2948 }
 0x1c5   :  { %v746_v13 = vadd.f32 1.0, %v2949_v40 }
 0x1c6   :  { %v367_v21 = vpop.f32.mrb[12].mxu0 }
 0x1c7   :  { %v3761_v30 = vadd.f32 %v367_v21, %v248_v22  ;;  %v369_v31 = vpop.f32.mrb[13].mxu0  ;;  %v2951_v62 = vpop.eup %2950  ;;  %v3769_v21 = vrot.slane %v243_v20, %v255_v1  ;;  %2952 = vrcp.f32 %v746_v13 }
 0x1c8   :  { %v3763_v60 = vadd.f32 %v369_v31, %v252_v23  ;;  %v740_v49 = vadd.f32 1.0, %v2951_v62  ;;  %v3771_v31 = vrot.slane %v243_v20, %v259_v8  ;;  %v4159_v62 = vmov 0.0  }
 0x1ca   :  { %4157 = vst [vmem:[#allocation4_spill] sm:$0xff] %v3763_v60  ;;  %v373_v33 = vpop.f32.mrb[14].mxu0  ;;  %2954 = vrcp.f32 %v740_v49 }
 0x1cb   :  { %v3765_v7 = vadd.f32 %v373_v33, %v248_v22  ;;  %v375_v46 = vpop.f32.mrb[15].mxu0 }
 0x1cc   :  { %v3767_v16 = vadd.f32 %v375_v46, %v252_v23 }
 0x1ce   :  { %4158 = vst [vmem:[#allocation5_spill] sm:$0xff] %v3767_v16 }
 0x1d1   :  { %v2953_v33 = vpop.eup %2952 }
 0x1d2   :  { %v756_v57 = vmul.f32 0.0, %v2953_v33 }
 0x1d4   :  { %v2955_v17 = vpop.eup %2954 }
 0x1ee   :  { %v728_v60 = vpop.f32.mrb[16].mxu0 }
 0x1ef   :  { %v2915_v22 = vadd.f32 %v728_v60, %v3769_v21  ;;  %v730_v23 = vpop.f32.mrb[17].mxu0 }
 0x1f0   :  { %v2916_v38 = vadd.f32 %v730_v23, %v3771_v31 }
 0x1f1   :  { %2956 = vtanh.f32 %v2915_v22 }
 0x1f2   :  { %v2161_v39 = vmul.f32 -1.442695, %v2916_v38 }
 0x1f4   :  { %2958 = vpow2.f32 %v2161_v39 }
 0x1fb   :  { %v2957_v46 = vpop.eup %2956 }
 0x1fc   :  { %v757_v32 = vmul.f32 %v2957_v46, %v2955_v17 }
 0x1fe   :  { %v2959_v1 = vpop.eup %2958  ;;  %v3775_v40 = vadd.f32 %v757_v32, %v756_v57 }
 0x1ff   :  { %v753_v20 = vadd.f32 1.0, %v2959_v1 }
 0x200   :  { %2960 = vtanh.f32 %v3775_v40 }
 0x201   :  { %2962 = vrcp.f32 %v753_v20 }
 0x20a   :  { %v2961_v60 = vpop.eup %2960 }
 0x20b   :  { %v2963_v8 = vpop.eup %2962 }
 0x20c   :  { %v3778_v49 = vmul.f32 %v2963_v8, %v2961_v60 }
 0x20e   :  { %832 = vmatmul.mubr.f32.vlgmr.msra.gmra.mrb[10].mxu1 %v3778_v49  ;;  %903 = vmatmul.mubr.f32.vlgmr.msra.gmra.mrb[18].mxu0 %v3778_v49 }
 0x20f   :  { %2470 = vmatpush1.bf16.msra.mxu1 %v3188_v24  ;;  %2502 = vmatpush1.bf16.msra.mxu0 %v3579_v18 }
 0x210   :  { %2472 = vmatprep.subr.bf16.mxu1 %v3201_v29  ;;  %2504 = vmatprep.subr.bf16.mxu0 %v3582_v19 }
 0x211   :  { %1008 = vmatprep.mubr.f32.mxu1 %v4159_v62  ;;  %1079 = vmatprep.mubr.f32.mxu0 %v4159_v62 }
 0x213   :  { %2474 = vmatpush1.bf16.msra.mxu1 %v3213_v34  ;;  %2506 = vmatpush1.bf16.msra.mxu0 %v3599_v26 }
 0x214   :  { %2476 = vmatprep.subr.bf16.mxu1 %v3238_v43  ;;  %2508 = vmatprep.subr.bf16.mxu0 %v3602_v27 }
 0x217   :  { %2478 = vmatpush1.bf16.msra.mxu1 %v3260_v51  ;;  %2510 = vmatpush1.bf16.msra.mxu0 %v3619_v36 }
 0x218   :  { %2480 = vmatprep.subr.bf16.mxu1 %v3269_v54  ;;  %2512 = vmatprep.subr.bf16.mxu0 %v3622_v37 }
 0x21b   :  { %2482 = vmatpush1.bf16.msra.mxu1 %v3291_v63  ;;  %2514 = vmatpush1.bf16.msra.mxu0 %v3639_v44 }
 0x21c   :  { %2484 = vmatprep.subr.bf16.mxu1 %v3300_v2  ;;  %2516 = vmatprep.subr.bf16.mxu0 %v3642_v45 }
 0x21f   :  { %2486 = vmatpush1.bf16.msra.mxu1 %v3321_v11  ;;  %2518 = vmatpush1.bf16.msra.mxu0 %v3659_v52 }
 0x220   :  { %2488 = vmatprep.subr.bf16.mxu1 %v3330_v15  ;;  %2520 = vmatprep.subr.bf16.mxu0 %v3662_v56 }
 0x223   :  { %2490 = vmatpush1.bf16.msra.mxu1 %v3351_v25  ;;  %2522 = vmatpush1.bf16.msra.mxu0 %v3679_v61 }
 0x224   :  { %2492 = vmatprep.subr.bf16.mxu1 %v3360_v28  ;;  %2524 = vmatprep.subr.bf16.mxu0 %v3682_v0 }
 0x227   :  { %2494 = vmatpush1.bf16.msra.mxu1 %v3369_v35  ;;  %2526 = vmatpush1.bf16.msra.mxu0 %v3699_v5 }
 0x228   :  { %2496 = vmatprep.subr.bf16.mxu1 %v3385_v41  ;;  %2528 = vmatprep.subr.bf16.mxu0 %v3702_v6 }
 0x22b   :  { %2498 = vmatpush1.bf16.msra.mxu1 %v3399_v47  ;;  %2530 = vmatpush1.bf16.msra.mxu0 %v3713_v55 }
 0x22c   :  { %2532 = vmatprep.subr.bf16.mxu1 %v3161_v14  ;;  %2564 = vmatprep.subr.bf16.mxu0 %v3563_v10 }
 0x2e1   :  { %v833_v13 = vpop.f32.mrb[10].mxu1  ;;  %v904_v22 = vpop.f32.mrb[18].mxu0 }
 0x2e2   :  { %v909_v23 = vadd.f32 %v833_v13, %v3741_v42  ;;  %v835_v38 = vpop.f32.mrb[11].mxu1  ;;  %v906_v39 = vpop.f32.mrb[19].mxu0  ;;  %v2917_v1 = vadd.f32 %v904_v22, %v3769_v21 }
 0x2e3   :  { %v910_v33 = vadd.f32 %v835_v38, %v3743_v48  ;;  %v2918_v57 = vadd.f32 %v906_v39, %v3771_v31 }
 0x2e4   :  { %v2162_v17 = vmul.f32 -1.442695, %v909_v23 }
 0x2e5   :  { %v2163_v46 = vmul.f32 -1.442695, %v910_v33  ;;  %v2164_v32 = vmul.f32 -1.442695, %v2918_v57 }
 0x2e6   :  { %2964 = vpow2.f32 %v2162_v17 }
 0x2e7   :  { %2966 = vpow2.f32 %v2163_v46 }
 0x2e8   :  { %2968 = vpow2.f32 %v2164_v32 }
 0x2e9   :  { %2970 = vtanh.f32 %v2917_v1 }
 0x2f0   :  { %v2965_v20 = vpop.eup %2964 }
 0x2f1   :  { %v2967_v60 = vpop.eup %2966  ;;  %v916_v8 = vadd.f32 1.0, %v2965_v20 }
 0x2f2   :  { %v922_v16 = vadd.f32 1.0, %v2967_v60  ;;  %v2969_v42 = vpop.eup %2968 }
 0x2f3   :  { %2972 = vrcp.f32 %v916_v8  ;;  %v2971_v13 = vpop.eup %2970  ;;  %v929_v33 = vadd.f32 1.0, %v2969_v42 }
 0x2f4   :  { %2974 = vrcp.f32 %v922_v16 }
 0x2f5   :  { %2976 = vrcp.f32 %v929_v33 }
 0x2fd   :  { %v2973_v48 = vpop.eup %2972 }
 0x2fe   :  { %v2975_v23 = vpop.eup %2974  ;;  %v933_v38 = vmul.f32 %v2973_v48, %v2971_v13 }
 0x2ff   :  { %v932_v17 = vmul.f32 %v2975_v23, %v3775_v40  ;;  %v2977_v22 = vpop.eup %2976 }
 0x301   :  { %v3821_v39 = vadd.f32 %v933_v38, %v932_v17 }
 0x303   :  { %2978 = vtanh.f32 %v3821_v39 }
 0x30d   :  { %v2979_v46 = vpop.eup %2978 }
 0x30e   :  { %v3824_v57 = vmul.f32 %v2979_v46, %v2977_v22 }
 0x310   :  { %1009 = vmatmul.mubr.f32.vlgmr.msra.gmra.mrb[12].mxu1 %v3824_v57  ;;  %1080 = vmatmul.mubr.f32.vlgmr.msra.gmra.mrb[20].mxu0 %v3824_v57 }
 0x311   :  { %2534 = vmatpush1.bf16.msra.mxu1 %v3188_v24  ;;  %2566 = vmatpush1.bf16.msra.mxu0 %v3579_v18 }
 0x312   :  { %2536 = vmatprep.subr.bf16.mxu1 %v3201_v29  ;;  %2568 = vmatprep.subr.bf16.mxu0 %v3582_v19 }
 0x313   :  { %1185 = vmatprep.mubr.f32.mxu1 %v4159_v62  ;;  %1256 = vmatprep.mubr.f32.mxu0 %v4159_v62 }
 0x315   :  { %2538 = vmatpush1.bf16.msra.mxu1 %v3213_v34  ;;  %2570 = vmatpush1.bf16.msra.mxu0 %v3599_v26 }
 0x316   :  { %2540 = vmatprep.subr.bf16.mxu1 %v3238_v43  ;;  %2572 = vmatprep.subr.bf16.mxu0 %v3602_v27 }
 0x319   :  { %2542 = vmatpush1.bf16.msra.mxu1 %v3260_v51  ;;  %2574 = vmatpush1.bf16.msra.mxu0 %v3619_v36 }
 0x31a   :  { %2544 = vmatprep.subr.bf16.mxu1 %v3269_v54  ;;  %2576 = vmatprep.subr.bf16.mxu0 %v3622_v37 }
 0x31d   :  { %2546 = vmatpush1.bf16.msra.mxu1 %v3291_v63  ;;  %2578 = vmatpush1.bf16.msra.mxu0 %v3639_v44 }
 0x31e   :  { %2548 = vmatprep.subr.bf16.mxu1 %v3300_v2  ;;  %2580 = vmatprep.subr.bf16.mxu0 %v3642_v45 }
 0x321   :  { %2550 = vmatpush1.bf16.msra.mxu1 %v3321_v11  ;;  %2582 = vmatpush1.bf16.msra.mxu0 %v3659_v52 }
 0x322   :  { %2552 = vmatprep.subr.bf16.mxu1 %v3330_v15  ;;  %2584 = vmatprep.subr.bf16.mxu0 %v3662_v56 }
 0x325   :  { %2554 = vmatpush1.bf16.msra.mxu1 %v3351_v25  ;;  %2586 = vmatpush1.bf16.msra.mxu0 %v3679_v61 }
 0x326   :  { %2556 = vmatprep.subr.bf16.mxu1 %v3360_v28  ;;  %2588 = vmatprep.subr.bf16.mxu0 %v3682_v0 }
 0x329   :  { %2558 = vmatpush1.bf16.msra.mxu1 %v3369_v35  ;;  %2590 = vmatpush1.bf16.msra.mxu0 %v3699_v5 }
 0x32a   :  { %2560 = vmatprep.subr.bf16.mxu1 %v3385_v41  ;;  %2592 = vmatprep.subr.bf16.mxu0 %v3702_v6 }
 0x32d   :  { %2562 = vmatpush1.bf16.msra.mxu1 %v3399_v47  ;;  %2594 = vmatpush1.bf16.msra.mxu0 %v3713_v55 }
 0x32e   :  { %2596 = vmatprep.subr.bf16.mxu1 %v3161_v14  ;;  %2628 = vmatprep.subr.bf16.mxu0 %v3563_v10 }
 0x3e3   :  { %v1010_v16 = vpop.f32.mrb[12].mxu1  ;;  %v1081_v40 = vpop.f32.mrb[20].mxu0 }
 0x3e4   :  { %v1086_v32 = vadd.f32 %v1010_v16, %v3745_v50  ;;  %v1012_v1 = vpop.f32.mrb[13].mxu1  ;;  %v1083_v20 = vpop.f32.mrb[21].mxu0  ;;  %v2919_v23 = vadd.f32 %v1081_v40, %v3769_v21 }
 0x3e5   :  { %v1087_v60 = vadd.f32 %v1012_v1, %v3747_v58  ;;  %v2920_v13 = vadd.f32 %v1083_v20, %v3771_v31 }
 0x3e6   :  { %v2165_v8 = vmul.f32 -1.442695, %v1086_v32 }
 0x3e7   :  { %v2166_v42 = vmul.f32 -1.442695, %v1087_v60  ;;  %v2167_v48 = vmul.f32 -1.442695, %v2920_v13 }
 0x3e8   :  { %2980 = vpow2.f32 %v2165_v8 }
 0x3e9   :  { %2982 = vpow2.f32 %v2166_v42 }
 0x3ea   :  { %2984 = vpow2.f32 %v2167_v48 }
 0x3eb   :  { %2986 = vtanh.f32 %v2919_v23 }
 0x3f2   :  { %v2981_v38 = vpop.eup %2980 }
 0x3f3   :  { %v2983_v33 = vpop.eup %2982  ;;  %v1093_v17 = vadd.f32 1.0, %v2981_v38 }
 0x3f4   :  { %v1099_v22 = vadd.f32 1.0, %v2983_v33  ;;  %v2985_v50 = vpop.eup %2984 }
 0x3f5   :  { %2988 = vrcp.f32 %v1093_v17  ;;  %v2987_v46 = vpop.eup %2986  ;;  %v1106_v1 = vadd.f32 1.0, %v2985_v50 }
 0x3f6   :  { %2990 = vrcp.f32 %v1099_v22 }
 0x3f7   :  { %2992 = vrcp.f32 %v1106_v1 }
 0x3ff   :  { %v2989_v58 = vpop.eup %2988 }
 0x400   :  { %v2991_v16 = vpop.eup %2990  ;;  %v1110_v32 = vmul.f32 %v2989_v58, %v2987_v46 }
 0x401   :  { %v1109_v60 = vmul.f32 %v2991_v16, %v3821_v39  ;;  %v2993_v40 = vpop.eup %2992 }
 0x403   :  { %v3867_v20 = vadd.f32 %v1110_v32, %v1109_v60 }
 0x405   :  { %2994 = vtanh.f32 %v3867_v20 }
 0x40f   :  { %v2995_v8 = vpop.eup %2994 }
 0x410   :  { %v3870_v42 = vmul.f32 %v2995_v8, %v2993_v40 }
 0x412   :  { %1186 = vmatmul.mubr.f32.vlgmr.msra.gmra.mrb[14].mxu1 %v3870_v42  ;;  %1257 = vmatmul.mubr.f32.vlgmr.msra.gmra.mrb[22].mxu0 %v3870_v42 }
 0x413   :  { %2598 = vmatpush1.bf16.msra.mxu1 %v3188_v24  ;;  %2630 = vmatpush1.bf16.msra.mxu0 %v3579_v18 }
 0x414   :  { %2600 = vmatprep.subr.bf16.mxu1 %v3201_v29  ;;  %2632 = vmatprep.subr.bf16.mxu0 %v3582_v19 }
 0x415   :  { %1362 = vmatprep.mubr.f32.mxu1 %v4159_v62  ;;  %1433 = vmatprep.mubr.f32.mxu0 %v4159_v62 }
 0x417   :  { %2602 = vmatpush1.bf16.msra.mxu1 %v3213_v34  ;;  %2634 = vmatpush1.bf16.msra.mxu0 %v3599_v26 }
 0x418   :  { %2604 = vmatprep.subr.bf16.mxu1 %v3238_v43  ;;  %2636 = vmatprep.subr.bf16.mxu0 %v3602_v27 }
 0x41b   :  { %2606 = vmatpush1.bf16.msra.mxu1 %v3260_v51  ;;  %2638 = vmatpush1.bf16.msra.mxu0 %v3619_v36 }
 0x41c   :  { %2608 = vmatprep.subr.bf16.mxu1 %v3269_v54  ;;  %2640 = vmatprep.subr.bf16.mxu0 %v3622_v37 }
 0x41f   :  { %2610 = vmatpush1.bf16.msra.mxu1 %v3291_v63  ;;  %2642 = vmatpush1.bf16.msra.mxu0 %v3639_v44 }
 0x420   :  { %2612 = vmatprep.subr.bf16.mxu1 %v3300_v2  ;;  %2644 = vmatprep.subr.bf16.mxu0 %v3642_v45 }
 0x423   :  { %2614 = vmatpush1.bf16.msra.mxu1 %v3321_v11  ;;  %2646 = vmatpush1.bf16.msra.mxu0 %v3659_v52 }
 0x424   :  { %2616 = vmatprep.subr.bf16.mxu1 %v3330_v15  ;;  %2648 = vmatprep.subr.bf16.mxu0 %v3662_v56 }
 0x427   :  { %2618 = vmatpush1.bf16.msra.mxu1 %v3351_v25  ;;  %2650 = vmatpush1.bf16.msra.mxu0 %v3679_v61 }
 0x428   :  { %2620 = vmatprep.subr.bf16.mxu1 %v3360_v28  ;;  %2652 = vmatprep.subr.bf16.mxu0 %v3682_v0 }
 0x42b   :  { %2622 = vmatpush1.bf16.msra.mxu1 %v3369_v35  ;;  %2654 = vmatpush1.bf16.msra.mxu0 %v3699_v5 }
 0x42c   :  { %2624 = vmatprep.subr.bf16.mxu1 %v3385_v41  ;;  %2656 = vmatprep.subr.bf16.mxu0 %v3702_v6 }
 0x42f   :  { %2626 = vmatpush1.bf16.msra.mxu1 %v3399_v47  ;;  %2658 = vmatpush1.bf16.msra.mxu0 %v3713_v55 }
 0x430   :  { %2660 = vmatprep.subr.bf16.mxu1 %v3161_v14  ;;  %2692 = vmatprep.subr.bf16.mxu0 %v3563_v10 }
 0x4e5   :  { %v1187_v39 = vpop.f32.mrb[14].mxu1  ;;  %v1258_v13 = vpop.f32.mrb[22].mxu0 }
 0x4e6   :  { %v1263_v48 = vadd.f32 %v1187_v39, %v3749_v59  ;;  %v1189_v23 = vpop.f32.mrb[15].mxu1  ;;  %v1260_v38 = vpop.f32.mrb[23].mxu0  ;;  %v2921_v58 = vadd.f32 %v1258_v13, %v3769_v21 }
 0x4e7   :  { %v1264_v33 = vadd.f32 %v1189_v23, %v3751_v3  ;;  %v2922_v50 = vadd.f32 %v1260_v38, %v3771_v31 }
 0x4e8   :  { %v2168_v17 = vmul.f32 -1.442695, %v1263_v48 }
 0x4e9   :  { %v2169_v22 = vmul.f32 -1.442695, %v1264_v33  ;;  %v2170_v46 = vmul.f32 -1.442695, %v2922_v50 }
 0x4ea   :  { %2996 = vpow2.f32 %v2168_v17 }
 0x4eb   :  { %2998 = vpow2.f32 %v2169_v22 }
 0x4ec   :  { %3000 = vpow2.f32 %v2170_v46 }
 0x4ed   :  { %3002 = vtanh.f32 %v2921_v58 }
 0x4f4   :  { %v2997_v16 = vpop.eup %2996 }
 0x4f5   :  { %v2999_v32 = vpop.eup %2998  ;;  %v1270_v1 = vadd.f32 1.0, %v2997_v16 }
 0x4f6   :  { %v1276_v60 = vadd.f32 1.0, %v2999_v32  ;;  %v3001_v59 = vpop.eup %3000 }
 0x4f7   :  { %3004 = vrcp.f32 %v1270_v1  ;;  %v3003_v40 = vpop.eup %3002  ;;  %v1283_v48 = vadd.f32 1.0, %v3001_v59 }
 0x4f8   :  { %3006 = vrcp.f32 %v1276_v60 }
 0x4f9   :  { %3008 = vrcp.f32 %v1283_v48 }
 0x501   :  { %v3005_v3 = vpop.eup %3004 }
 0x502   :  { %v3007_v8 = vpop.eup %3006  ;;  %v1287_v39 = vmul.f32 %v3005_v3, %v3003_v40 }
 0x503   :  { %v1286_v23 = vmul.f32 %v3007_v8, %v3867_v20  ;;  %v3009_v13 = vpop.eup %3008 }
 0x505   :  { %v3913_v38 = vadd.f32 %v1287_v39, %v1286_v23 }
 0x507   :  { %3010 = vtanh.f32 %v3913_v38 }
 0x511   :  { %v3011_v33 = vpop.eup %3010 }
 0x512   :  { %v3916_v17 = vmul.f32 %v3011_v33, %v3009_v13 }
 0x514   :  { %1363 = vmatmul.mubr.f32.vlgmr.msra.gmra.mrb[16].mxu1 %v3916_v17  ;;  %1434 = vmatmul.mubr.f32.vlgmr.msra.gmra.mrb[24].mxu0 %v3916_v17 }
 0x515   :  { %2662 = vmatpush1.bf16.msra.mxu1 %v3188_v24  ;;  %2694 = vmatpush1.bf16.msra.mxu0 %v3579_v18 }
 0x516   :  { %2664 = vmatprep.subr.bf16.mxu1 %v3201_v29  ;;  %2696 = vmatprep.subr.bf16.mxu0 %v3582_v19 }
 0x517   :  { %1539 = vmatprep.mubr.f32.mxu1 %v4159_v62  ;;  %1610 = vmatprep.mubr.f32.mxu0 %v4159_v62 }
 0x519   :  { %2666 = vmatpush1.bf16.msra.mxu1 %v3213_v34  ;;  %2698 = vmatpush1.bf16.msra.mxu0 %v3599_v26 }
 0x51a   :  { %2668 = vmatprep.subr.bf16.mxu1 %v3238_v43  ;;  %2700 = vmatprep.subr.bf16.mxu0 %v3602_v27 }
 0x51d   :  { %2670 = vmatpush1.bf16.msra.mxu1 %v3260_v51  ;;  %2702 = vmatpush1.bf16.msra.mxu0 %v3619_v36 }
 0x51e   :  { %2672 = vmatprep.subr.bf16.mxu1 %v3269_v54  ;;  %2704 = vmatprep.subr.bf16.mxu0 %v3622_v37 }
 0x521   :  { %2674 = vmatpush1.bf16.msra.mxu1 %v3291_v63  ;;  %2706 = vmatpush1.bf16.msra.mxu0 %v3639_v44 }
 0x522   :  { %2676 = vmatprep.subr.bf16.mxu1 %v3300_v2  ;;  %2708 = vmatprep.subr.bf16.mxu0 %v3642_v45 }
 0x525   :  { %2678 = vmatpush1.bf16.msra.mxu1 %v3321_v11  ;;  %2710 = vmatpush1.bf16.msra.mxu0 %v3659_v52 }
 0x526   :  { %2680 = vmatprep.subr.bf16.mxu1 %v3330_v15  ;;  %2712 = vmatprep.subr.bf16.mxu0 %v3662_v56 }
 0x529   :  { %2682 = vmatpush1.bf16.msra.mxu1 %v3351_v25  ;;  %2714 = vmatpush1.bf16.msra.mxu0 %v3679_v61 }
 0x52a   :  { %2684 = vmatprep.subr.bf16.mxu1 %v3360_v28  ;;  %2716 = vmatprep.subr.bf16.mxu0 %v3682_v0 }
 0x52d   :  { %2686 = vmatpush1.bf16.msra.mxu1 %v3369_v35  ;;  %2718 = vmatpush1.bf16.msra.mxu0 %v3699_v5 }
 0x52e   :  { %2688 = vmatprep.subr.bf16.mxu1 %v3385_v41  ;;  %2720 = vmatprep.subr.bf16.mxu0 %v3702_v6 }
 0x531   :  { %2690 = vmatpush1.bf16.msra.mxu1 %v3399_v47  ;;  %2722 = vmatpush1.bf16.msra.mxu0 %v3713_v55 }
 0x532   :  { %2724 = vmatprep.subr.bf16.mxu1 %v3161_v14  ;;  %2756 = vmatprep.subr.bf16.mxu0 %v3563_v10 }
 0x5e7   :  { %v1364_v20 = vpop.f32.mrb[16].mxu1  ;;  %v1435_v22 = vpop.f32.mrb[24].mxu0 }
 0x5e8   :  { %v1440_v50 = vadd.f32 %v1364_v20, %v3753_v4  ;;  %v1366_v46 = vpop.f32.mrb[17].mxu1  ;;  %v1437_v58 = vpop.f32.mrb[25].mxu0  ;;  %v2923_v40 = vadd.f32 %v1435_v22, %v3769_v21 }
 0x5e9   :  { %v1441_v16 = vadd.f32 %v1366_v46, %v3755_v12  ;;  %v2924_v60 = vadd.f32 %v1437_v58, %v3771_v31 }
 0x5ea   :  { %v2171_v32 = vmul.f32 -1.442695, %v1440_v50 }
 0x5eb   :  { %v2172_v1 = vmul.f32 -1.442695, %v1441_v16  ;;  %v2173_v59 = vmul.f32 -1.442695, %v2924_v60 }
 0x5ec   :  { %3012 = vpow2.f32 %v2171_v32 }
 0x5ed   :  { %3014 = vpow2.f32 %v2172_v1 }
 0x5ee   :  { %3016 = vpow2.f32 %v2173_v59 }
 0x5ef   :  { %3018 = vtanh.f32 %v2923_v40 }
 0x5f6   :  { %v3013_v3 = vpop.eup %3012 }
 0x5f7   :  { %v3015_v8 = vpop.eup %3014  ;;  %v1447_v39 = vadd.f32 1.0, %v3013_v3 }
 0x5f8   :  { %v1453_v48 = vadd.f32 1.0, %v3015_v8  ;;  %v3017_v4 = vpop.eup %3016 }
 0x5f9   :  { %3020 = vrcp.f32 %v1447_v39  ;;  %v3019_v23 = vpop.eup %3018  ;;  %v1460_v20 = vadd.f32 1.0, %v3017_v4 }
 0x5fa   :  { %3022 = vrcp.f32 %v1453_v48 }
 0x5fb   :  { %3024 = vrcp.f32 %v1460_v20 }
 0x603   :  { %v3021_v12 = vpop.eup %3020 }
 0x604   :  { %v3023_v13 = vpop.eup %3022  ;;  %v1464_v33 = vmul.f32 %v3021_v12, %v3019_v23 }
 0x605   :  { %v1463_v50 = vmul.f32 %v3023_v13, %v3913_v38  ;;  %v3025_v22 = vpop.eup %3024 }
 0x607   :  { %v3959_v46 = vadd.f32 %v1464_v33, %v1463_v50 }
 0x609   :  { %3026 = vtanh.f32 %v3959_v46 }
 0x613   :  { %v3027_v58 = vpop.eup %3026 }
 0x614   :  { %v3962_v16 = vmul.f32 %v3027_v58, %v3025_v22 }
 0x616   :  { %1540 = vmatmul.mubr.f32.vlgmr.msra.gmra.mrb[18].mxu1 %v3962_v16  ;;  %1611 = vmatmul.mubr.f32.vlgmr.msra.gmra.mrb[26].mxu0 %v3962_v16 }
 0x617   :  { %2726 = vmatpush1.bf16.msra.mxu1 %v3188_v24  ;;  %2758 = vmatpush1.bf16.msra.mxu0 %v3579_v18 }
 0x618   :  { %2728 = vmatprep.subr.bf16.mxu1 %v3201_v29  ;;  %2760 = vmatprep.subr.bf16.mxu0 %v3582_v19 }
 0x619   :  { %1716 = vmatprep.mubr.f32.mxu1 %v4159_v62  ;;  %1787 = vmatprep.mubr.f32.mxu0 %v4159_v62 }
 0x61b   :  { %2730 = vmatpush1.bf16.msra.mxu1 %v3213_v34  ;;  %2762 = vmatpush1.bf16.msra.mxu0 %v3599_v26 }
 0x61c   :  { %2732 = vmatprep.subr.bf16.mxu1 %v3238_v43  ;;  %2764 = vmatprep.subr.bf16.mxu0 %v3602_v27 }
 0x61f   :  { %2734 = vmatpush1.bf16.msra.mxu1 %v3260_v51  ;;  %2766 = vmatpush1.bf16.msra.mxu0 %v3619_v36 }
 0x620   :  { %2736 = vmatprep.subr.bf16.mxu1 %v3269_v54  ;;  %2768 = vmatprep.subr.bf16.mxu0 %v3622_v37 }
 0x623   :  { %2738 = vmatpush1.bf16.msra.mxu1 %v3291_v63  ;;  %2770 = vmatpush1.bf16.msra.mxu0 %v3639_v44 }
 0x624   :  { %2740 = vmatprep.subr.bf16.mxu1 %v3300_v2  ;;  %2772 = vmatprep.subr.bf16.mxu0 %v3642_v45 }
 0x627   :  { %2742 = vmatpush1.bf16.msra.mxu1 %v3321_v11  ;;  %2774 = vmatpush1.bf16.msra.mxu0 %v3659_v52 }
 0x628   :  { %2744 = vmatprep.subr.bf16.mxu1 %v3330_v15  ;;  %2776 = vmatprep.subr.bf16.mxu0 %v3662_v56 }
 0x62b   :  { %2746 = vmatpush1.bf16.msra.mxu1 %v3351_v25  ;;  %2778 = vmatpush1.bf16.msra.mxu0 %v3679_v61 }
 0x62c   :  { %2748 = vmatprep.subr.bf16.mxu1 %v3360_v28  ;;  %2780 = vmatprep.subr.bf16.mxu0 %v3682_v0 }
 0x62f   :  { %2750 = vmatpush1.bf16.msra.mxu1 %v3369_v35  ;;  %2782 = vmatpush1.bf16.msra.mxu0 %v3699_v5 }
 0x630   :  { %2752 = vmatprep.subr.bf16.mxu1 %v3385_v41  ;;  %2784 = vmatprep.subr.bf16.mxu0 %v3702_v6 }
 0x633   :  { %2754 = vmatpush1.bf16.msra.mxu1 %v3399_v47  ;;  %2786 = vmatpush1.bf16.msra.mxu0 %v3713_v55 }
 0x634   :  { %2788 = vmatprep.subr.bf16.mxu1 %v3161_v14  ;;  %2820 = vmatprep.subr.bf16.mxu0 %v3563_v10 }
 0x6e9   :  { %v1541_v38 = vpop.f32.mrb[18].mxu1  ;;  %v1612_v32 = vpop.f32.mrb[26].mxu0 }
 0x6ea   :  { %v1617_v1 = vadd.f32 %v1541_v38, %v3757_v9  ;;  %v1543_v60 = vpop.f32.mrb[19].mxu1  ;;  %v1614_v59 = vpop.f32.mrb[27].mxu0  ;;  %v2925_v4 = vadd.f32 %v1612_v32, %v3769_v21 }
 0x6eb   :  { %v1618_v40 = vadd.f32 %v1543_v60, %v3759_v53  ;;  %v2926_v39 = vadd.f32 %v1614_v59, %v3771_v31  ;;  %v2013_v60 = vld [vmem:[%s4152_s6 + $0x20] sm:$0xff]  ;;  %v2014_v59 = vld [vmem:[%s4152_s6 + $0x28] sm:$0xff] }
 0x6ec   :  { %v2174_v3 = vmul.f32 -1.442695, %v1617_v1 }
 0x6ed   :  { %v2175_v8 = vmul.f32 -1.442695, %v1618_v40  ;;  %v2176_v48 = vmul.f32 -1.442695, %v2926_v39  ;;  %v2859_v40 = vpack.c.bf16 %v2014_v59, %v2013_v60 }
 0x6ee   :  { %3028 = vpow2.f32 %v2174_v3  ;;  %v2015_v3 = vld [vmem:[%s4152_s6 + $0x30] sm:$0xff] }
 0x6ef   :  { %3030 = vpow2.f32 %v2175_v8  ;;  %v2016_v8 = vld [vmem:[%s4152_s6 + $0x38] sm:$0xff] }
 0x6f0   :  { %3032 = vpow2.f32 %v2176_v48  ;;  %v2863_v39 = vpack.c.bf16 %v2016_v8, %v2015_v3  ;;  %v2017_v48 = vld [vmem:[%s4152_s6 + $0x40] sm:$0xff] }
 0x6f1   :  { %3034 = vtanh.f32 %v2925_v4 }
 0x6f8   :  { %v3029_v14 = vpop.eup %3028 }
 0x6f9   :  { %v3031_v23 = vpop.eup %3030  ;;  %v1624_v10 = vadd.f32 1.0, %v3029_v14  ;;  %v2019_v14 = vld [vmem:[%s4152_s6 + $0x50] sm:$0xff] }
 0x6fa   :  { %v1630_v12 = vadd.f32 1.0, %v3031_v23  ;;  %v3033_v9 = vpop.eup %3032  ;;  %v2020_v23 = vld [vmem:[%s4152_s6 + $0x58] sm:$0xff] }
 0x6fb   :  { %3036 = vrcp.f32 %v1624_v10  ;;  %v3035_v13 = vpop.eup %3034  ;;  %v1637_v50 = vadd.f32 1.0, %v3033_v9  ;;  %v2871_v10 = vpack.c.bf16 %v2020_v23, %v2019_v14  ;;  %v2022_v9 = vld [vmem:[%s4152_s6 + $0x68] sm:$0xff] }
 0x6fc   :  { %3038 = vrcp.f32 %v1630_v12  ;;  %v2021_v12 = vld [vmem:[%s4152_s6 + $0x60] sm:$0xff] }
 0x6fd   :  { %3040 = vrcp.f32 %v1637_v50 }
 0x705   :  { %v3037_v53 = vpop.eup %3036 }
 0x706   :  { %v3039_v33 = vpop.eup %3038  ;;  %v1641_v20 = vmul.f32 %v3037_v53, %v3035_v13  ;;  %v2875_v13 = vpack.c.bf16 %v2022_v9, %v2021_v12  ;;  %v2023_v53 = vld [vmem:[%s4152_s6 + $0x70] sm:$0xff] }
 0x707   :  { %v1640_v22 = vmul.f32 %v3039_v33, %v3959_v46  ;;  %v3041_v38 = vpop.eup %3040  ;;  %v2024_v33 = vld [vmem:[%s4152_s6 + $0x78] sm:$0xff] }
 0x709   :  { %v4005_v58 = vadd.f32 %v1641_v20, %v1640_v22  ;;  %v2879_v20 = vpack.c.bf16 %v2024_v33, %v2023_v53 }
 0x70b   :  { %3042 = vtanh.f32 %v4005_v58 }
 0x715   :  { %v3043_v32 = vpop.eup %3042 }
 0x716   :  { %v4008_v1 = vmul.f32 %v3043_v32, %v3041_v38 }
 0x718   :  { %1717 = vmatmul.mubr.f32.vlgmr.msra.gmra.mrb[20].mxu1 %v4008_v1  ;;  %1788 = vmatmul.mubr.f32.vlgmr.msra.gmra.mrb[28].mxu0 %v4008_v1 }
 0x719   :  { %2790 = vmatpush1.bf16.msra.mxu1 %v3188_v24  ;;  %2822 = vmatpush1.bf16.msra.mxu0 %v3579_v18  ;;  %v2009_v24 = vld [vmem:[%s4152_s6] sm:$0xff] }
 0x71a   :  { %2792 = vmatprep.subr.bf16.mxu1 %v3201_v29  ;;  %2824 = vmatprep.subr.bf16.mxu0 %v3582_v19  ;;  %v2010_v29 = vld [vmem:[%s4152_s6 + $0x8] sm:$0xff] }
 0x71b   :  { %1893 = vmatprep.mubr.f32.mxu1 %v4159_v62  ;;  %1964 = vmatprep.mubr.f32.mxu0 %v4159_v62 }
 0x71d   :  { %2794 = vmatpush1.bf16.msra.mxu1 %v3213_v34  ;;  %2826 = vmatpush1.bf16.msra.mxu0 %v3599_v26  ;;  %v2851_v34 = vpack.c.bf16 %v2010_v29, %v2009_v24  ;;  %v4161_v24 = vld [vmem:[#allocation5_spill] sm:$0xff] }
 0x71e   :  { %2796 = vmatprep.subr.bf16.mxu1 %v3238_v43  ;;  %2828 = vmatprep.subr.bf16.mxu0 %v3602_v27 }
 0x721   :  { %2798 = vmatpush1.bf16.msra.mxu1 %v3260_v51  ;;  %2830 = vmatpush1.bf16.msra.mxu0 %v3619_v36 }
 0x722   :  { %2800 = vmatprep.subr.bf16.mxu1 %v3269_v54  ;;  %2832 = vmatprep.subr.bf16.mxu0 %v3622_v37 }
 0x725   :  { %2802 = vmatpush1.bf16.msra.mxu1 %v3291_v63  ;;  %2834 = vmatpush1.bf16.msra.mxu0 %v3639_v44 }
 0x726   :  { %2804 = vmatprep.subr.bf16.mxu1 %v3300_v2  ;;  %2836 = vmatprep.subr.bf16.mxu0 %v3642_v45 }
 0x729   :  { %2806 = vmatpush1.bf16.msra.mxu1 %v3321_v11  ;;  %2838 = vmatpush1.bf16.msra.mxu0 %v3659_v52  ;;  %v4160_v11 = vld [vmem:[#allocation4_spill] sm:$0xff] }
 0x72a   :  { %2808 = vmatprep.subr.bf16.mxu1 %v3330_v15  ;;  %2840 = vmatprep.subr.bf16.mxu0 %v3662_v56 }
 0x72d   :  { %2810 = vmatpush1.bf16.msra.mxu1 %v3351_v25  ;;  %2842 = vmatpush1.bf16.msra.mxu0 %v3679_v61 }
 0x72e   :  { %2812 = vmatprep.subr.bf16.mxu1 %v3360_v28  ;;  %2844 = vmatprep.subr.bf16.mxu0 %v3682_v0 }
 0x731   :  { %2814 = vmatpush1.bf16.msra.mxu1 %v3369_v35  ;;  %2846 = vmatpush1.bf16.msra.mxu0 %v3699_v5  ;;  %v2011_v5 = vld [vmem:[%s4152_s6 + $0x10] sm:$0xff] }
 0x732   :  { %2816 = vmatprep.subr.bf16.mxu1 %v3385_v41  ;;  %2848 = vmatprep.subr.bf16.mxu0 %v3702_v6  ;;  %v2012_v6 = vld [vmem:[%s4152_s6 + $0x18] sm:$0xff] }
 0x733   :  { %v2855_v46 = vpack.c.bf16 %v2012_v6, %v2011_v5 }
 0x735   :  { %2818 = vmatpush1.bf16.msra.mxu1 %v3399_v47  ;;  %2850 = vmatpush1.bf16.msra.mxu0 %v3713_v55 }
 0x736   :  { %2852 = vmatprep.subr.bf16.mxu1 %v2851_v34 }
 0x7eb   :  { %v1718_v43 = vpop.f32.mrb[20].mxu1  ;;  %v1789_v51 = vpop.f32.mrb[28].mxu0 }
 0x7ec   :  { %v1794_v54 = vadd.f32 %v1718_v43, %v3761_v30  ;;  %v1720_v63 = vpop.f32.mrb[21].mxu1  ;;  %v1791_v2 = vpop.f32.mrb[29].mxu0  ;;  %v2927_v47 = vadd.f32 %v1789_v51, %v3769_v21 }
 0x7ed   :  { %v1795_v15 = vadd.f32 %v1720_v63, %v4160_v11  ;;  %v2928_v35 = vadd.f32 %v1791_v2, %v3771_v31 }
 0x7ee   :  { %v2177_v25 = vmul.f32 -1.442695, %v1794_v54 }
 0x7ef   :  { %v2178_v28 = vmul.f32 -1.442695, %v1795_v15  ;;  %v2179_v41 = vmul.f32 -1.442695, %v2928_v35 }
 0x7f0   :  { %3044 = vpow2.f32 %v2177_v25 }
 0x7f1   :  { %3046 = vpow2.f32 %v2178_v28 }
 0x7f2   :  { %3048 = vpow2.f32 %v2179_v41 }
 0x7f3   :  { %3050 = vtanh.f32 %v2927_v47 }
 0x7fa   :  { %v3045_v18 = vpop.eup %3044 }
 0x7fb   :  { %v3047_v19 = vpop.eup %3046  ;;  %v1801_v26 = vadd.f32 1.0, %v3045_v18 }
 0x7fc   :  { %v1807_v27 = vadd.f32 1.0, %v3047_v19  ;;  %v3049_v36 = vpop.eup %3048 }
 0x7fd   :  { %3052 = vrcp.f32 %v1801_v26  ;;  %v3051_v37 = vpop.eup %3050  ;;  %v1814_v56 = vadd.f32 1.0, %v3049_v36 }
 0x7fe   :  { %3054 = vrcp.f32 %v1807_v27 }
 0x7ff   :  { %3056 = vrcp.f32 %v1814_v56 }
 0x807   :  { %v3053_v44 = vpop.eup %3052 }
 0x808   :  { %v3055_v45 = vpop.eup %3054  ;;  %v1818_v52 = vmul.f32 %v3053_v44, %v3051_v37 }
 0x809   :  { %v1817_v61 = vmul.f32 %v3055_v45, %v4005_v58  ;;  %v3057_v55 = vpop.eup %3056 }
 0x80b   :  { %v4055_v0 = vadd.f32 %v1818_v52, %v1817_v61 }
 0x80d   :  { %3058 = vtanh.f32 %v4055_v0 }
 0x817   :  { %v3059_v30 = vpop.eup %3058 }
 0x818   :  { %v1821_v62 = vmul.f32 %v3059_v30, %v3057_v55 }
 0x81a   :  { %1894 = vmatmul.mubr.f32.vlgmr.msra.gmra.mrb[22].mxu1 %v1821_v62  ;;  %1965 = vmatmul.mubr.f32.vlgmr.msra.gmra.mrb[30].mxu0 %v1821_v62 }
 0x81b   :  { %2854 = vmatpush3.bf16.msra.mxu1 %v2851_v34  ;;  %2263 = vmatprep.mubr.f32.mxu1 %v3778_v49  ;;  %v2018_v49 = vld [vmem:[%s4152_s6 + $0x48] sm:$0xff] }
 0x81c   :  { %2856 = vmatprep.subr.bf16.mxu1 %v2855_v46  ;;  %v2867_v4 = vpack.c.bf16 %v2018_v49, %v2017_v48 }
 0x81f   :  { %2858 = vmatpush3.bf16.msra.mxu1 %v2855_v46 }
 0x820   :  { %2860 = vmatprep.subr.bf16.mxu1 %v2859_v40 }
 0x823   :  { %2862 = vmatpush3.bf16.msra.mxu1 %v2859_v40 }
 0x824   :  { %2864 = vmatprep.subr.bf16.mxu1 %v2863_v39 }
 0x827   :  { %2866 = vmatpush3.bf16.msra.mxu1 %v2863_v39 }
 0x828   :  { %2868 = vmatprep.subr.bf16.mxu1 %v2867_v4 }
 0x82b   :  { %2870 = vmatpush3.bf16.msra.mxu1 %v2867_v4 }
 0x82c   :  { %2872 = vmatprep.subr.bf16.mxu1 %v2871_v10 }
 0x82f   :  { %2874 = vmatpush3.bf16.msra.mxu1 %v2871_v10 }
 0x830   :  { %2876 = vmatprep.subr.bf16.mxu1 %v2875_v13 }
 0x833   :  { %2878 = vmatpush3.bf16.msra.mxu1 %v2875_v13 }
 0x834   :  { %2880 = vmatprep.subr.bf16.mxu1 %v2879_v20 }
 0x837   :  { %2882 = vmatpush3.bf16.msra.mxu1 %v2879_v20 }
 0x83a   :  { %2264 = vmatmul.mubr.f32.vlgmr.msra.gmra.mrb[24].mxu1 %v3824_v57 }
 0x83b   :  { %2266 = vmatprep.mubr.f32.mxu1 %v3870_v42 }
 0x83e   :  { %2267 = vmatmul.mubr.f32.gmra.mrb[26].mxu1 %v3916_v17 }
 0x83f   :  { %2269 = vmatprep.mubr.f32.mxu1 %v3962_v16 }
 0x842   :  { %2270 = vmatmul.mubr.f32.gmra.mrb[28].mxu1 %v4008_v1 }
 0x843   :  { %2272 = vmatprep.mubr.f32.mxu1 %v1821_v62 }
 0x8ed   :  { %v1895_v50 = vpop.f32.mrb[22].mxu1  ;;  %v1966_v22 = vpop.f32.mrb[30].mxu0 }
 0x8ee   :  { %v1971_v58 = vadd.f32 %v1895_v50, %v3765_v7  ;;  %v1897_v38 = vpop.f32.mrb[23].mxu1  ;;  %v1968_v32 = vpop.f32.mrb[31].mxu0  ;;  %v2929_v17 = vadd.f32 %v1966_v22, %v3769_v21  ;;  %v2183_v21 = vld [vmem:[%s4153_s7] ss:$0 sm:$0xff] }
 0x8ef   :  { %v1972_v29 = vadd.f32 %v1897_v38, %v4161_v24  ;;  %v2930_v57 = vadd.f32 %v1968_v32, %v3771_v31 }
 0x8f0   :  { %v2180_v34 = vmul.f32 -1.442695, %v1971_v58 }
 0x8f1   :  { %v2181_v43 = vmul.f32 -1.442695, %v1972_v29  ;;  %v2182_v42 = vmul.f32 -1.442695, %v2930_v57 }
 0x8f2   :  { %3060 = vpow2.f32 %v2180_v34 }
 0x8f3   :  { %3062 = vpow2.f32 %v2181_v43 }
 0x8f4   :  { %3064 = vpow2.f32 %v2182_v42 }
 0x8f5   :  { %3066 = vtanh.f32 %v2929_v17 }
 0x8fc   :  { %v3061_v16 = vpop.eup %3060 }
 0x8fd   :  { %v3063_v1 = vpop.eup %3062  ;;  %v1978_v51 = vadd.f32 1.0, %v3061_v16 }
 0x8fe   :  { %v1984_v54 = vadd.f32 1.0, %v3063_v1  ;;  %v3065_v7 = vpop.eup %3064 }
 0x8ff   :  { %3068 = vrcp.f32 %v1978_v51  ;;  %v3067_v63 = vpop.eup %3066  ;;  %v1991_v25 = vadd.f32 1.0, %v3065_v7 }
 0x900   :  { %3070 = vrcp.f32 %v1984_v54 }
 0x901   :  { %3072 = vrcp.f32 %v1991_v25 }
 0x909   :  { %v3069_v2 = vpop.eup %3068 }
 0x90a   :  { %v3071_v11 = vpop.eup %3070  ;;  %v1995_v15 = vmul.f32 %v3069_v2, %v3067_v63 }
 0x90b   :  { %v1994_v28 = vmul.f32 %v3071_v11, %v4055_v0  ;;  %v3073_v56 = vpop.eup %3072 }
 0x90d   :  { %v2265_v31 = vpop.f32.mrb[24].mxu1  ;;  %v1996_v35 = vadd.f32 %v1995_v15, %v1994_v28 }
 0x90e   :  { %v2104_v41 = vadd.f32 %v2265_v31, %v2183_v21  ;;  %v2098_v47 = vpop.f32.mrb[25].mxu1 }
 0x90f   :  { %v2099_v18 = vadd.f32 %v2183_v21, %v2098_v47  ;;  %3074 = vtanh.f32 %v1996_v35 }
 0x910   :  { %2138 = vst.msk [vmem:[%s4154_s8 + $0x8] sm:$0xff] %vm45_vm1, %v2104_v41 }
 0x911   :  { %2137 = vst.msk [vmem:[%s4154_s8] sm:$0xff] %vm45_vm1, %v2099_v18  ;;  %v2268_v19 = vpop.f32.mrb[26].mxu1 }
 0x912   :  { %v2114_v26 = vadd.f32 %v2268_v19, %v2183_v21  ;;  %v2108_v27 = vpop.f32.mrb[27].mxu1 }
 0x913   :  { %v2109_v36 = vadd.f32 %v2183_v21, %v2108_v27 }
 0x914   :  { %2140 = vst.msk [vmem:[%s4154_s8 + $0x18] sm:$0xff] %vm45_vm1, %v2114_v26 }
 0x915   :  { %2139 = vst.msk [vmem:[%s4154_s8 + $0x10] sm:$0xff] %vm45_vm1, %v2109_v36  ;;  %v2271_v37 = vpop.f32.mrb[28].mxu1 }
 0x916   :  { %v2124_v44 = vadd.f32 %v2271_v37, %v2183_v21  ;;  %v2118_v45 = vpop.f32.mrb[29].mxu1 }
 0x917   :  { %v2119_v52 = vadd.f32 %v2183_v21, %v2118_v45 }
 0x918   :  { %2142 = vst.msk [vmem:[%s4154_s8 + $0x28] sm:$0xff] %vm45_vm1, %v2124_v44 }
 0x919   :  { %v3075_v61 = vpop.eup %3074  ;;  %2141 = vst.msk [vmem:[%s4154_s8 + $0x20] sm:$0xff] %vm45_vm1, %v2119_v52 }
 0x91a   :  { %v1998_v0 = vmul.f32 %v3075_v61, %v3073_v56 }
 0x91c   :  { %2273 = vmatmul.mubr.f32.gmra.mrb[30].mxu1 %v1998_v0 }
 0x9ef   :  { %v2274_v5 = vpop.f32.mrb[30].mxu1 }
 0x9f0   :  { %v2134_v6 = vadd.f32 %v2274_v5, %v2183_v21  ;;  %v2128_v55 = vpop.f32.mrb[31].mxu1 }
 0x9f1   :  { %v2129_v30 = vadd.f32 %v2183_v21, %v2128_v55 }
 0x9f2   :  { %2144 = vst.msk [vmem:[%s4154_s8 + $0x38] sm:$0xff] %vm45_vm1, %v2134_v6 }
 0x9f3   :  { %2143 = vst.msk [vmem:[%s4154_s8 + $0x30] sm:$0xff] %vm45_vm1, %v2129_v30 }

</bundles_post_ra>
